<compile_context>
chip_gen: v7x
topology: tpu7x:2x2x1
jax: 0.10.0
libtpu: 0.0.40
codegen_flags: <defaults>
</compile_context>

<pallas_src>
import jax
import jax.numpy as jnp
from jax.experimental import pallas as pl
from jax.experimental.pallas import tpu as pltpu


# ----------------------------------------------------------------------------
# Kernel: one batch tile -> o = sigmoid(x @ Wc + bc)
# ----------------------------------------------------------------------------
def collapsed_mlp_kernel(x_ref, wc_ref, bc_ref, o_ref):
    h = jnp.dot(x_ref[...], wc_ref[...], preferred_element_type=jnp.float32)
    h = h + bc_ref[...]                       # (tb, 19) + (1, 19) broadcast (VPU)
    o_ref[...] = jax.nn.sigmoid(h).astype(o_ref.dtype)


# ----------------------------------------------------------------------------
# One-time parameter collapse (hoisted out of the steady-state forward path)
# ----------------------------------------------------------------------------
def collapse_params(params):
    """params: dict name -> (W, b) with PyTorch shapes W:(out,in), b:(out,)."""
    (w1, b1), (w2, b2), (w3, b3), (w4, b4) = (
        params["l1"], params["l2"], params["l3"], params["l4"])
    # h = (((x@W1^T + b1)@W2^T + b2)@W3^T + b3)@W4^T + b4
    wc = (w1.T @ w2.T @ w3.T @ w4.T).astype(jnp.float32)                   # (19, 19)
    bc = (((b1 @ w2.T + b2) @ w3.T + b3) @ w4.T + b4).astype(jnp.float32)  # (19,)
    return wc, bc.reshape(1, -1)


# ----------------------------------------------------------------------------
# Forward wrapper
# ----------------------------------------------------------------------------
def autoencoder_forward(x, wc, bc, *, tb=8192, out_dtype=jnp.float32):
    """x: (B, 19) float32; wc: (19, 19); bc: (1, 19) — from collapse_params."""
    B, F_in = x.shape
    F_out = wc.shape[1]

    # Batch tile: multiple of 8 sublanes, clamped so a small batch is ONE block
    # (no padding, no post-slice).  Cap at 8192 so double-buffered x/out tiles
    # stay well inside v7x's 64 MiB VMEM while amortizing per-step overhead.
    b_round8 = ((B + 7) // 8) * 8
    tb = max(8, min(tb, b_round8))
    n_blocks = pl.cdiv(B, tb)

    return pl.pallas_call(
        collapsed_mlp_kernel,
        out_shape=jax.ShapeDtypeStruct((B, F_out), out_dtype),
        grid=(n_blocks,),
        in_specs=[
            # streamed batch tiles (double-buffered by the pipeline); partial
            # last block is masked on writeback — safe, no cross-row reduction.
            pl.BlockSpec((tb, F_in), lambda i: (i, 0)),
            # collapsed weight + bias: resident in VMEM across the whole grid
            pl.BlockSpec((F_in, F_out), lambda i: (0, 0)),
            pl.BlockSpec((1, F_out), lambda i: (0, 0)),
        ],
        out_specs=pl.BlockSpec((tb, F_out), lambda i: (i, 0)),
        compiler_params=pltpu.CompilerParams(
            dimension_semantics=("parallel",)),   # megacore-shardable for large B
    )(x, wc, bc)


# ----------------------------------------------------------------------------
# Reference (un-collapsed 4-layer chain, mirrors the PyTorch module exactly)
# ----------------------------------------------------------------------------
def reference_forward(x, params):
    (w1, b1), (w2, b2), (w3, b3), (w4, b4) = (
        params["l1"], params["l2"], params["l3"], params["l4"])
    h = x @ w1.T + b1
    h = h @ w2.T + b2
    h = h @ w3.T + b3
    h = h @ w4.T + b4
    return jax.nn.sigmoid(h)


def init_params(key):
    """Deterministic init mirroring nn.Linear shapes: W (out, in), b (out,)."""
    dims = [(19, 12), (12, 2), (2, 12), (12, 19)]
    names = ["l1", "l2", "l3", "l4"]
    params = {}
    for name, (fan_in, fan_out) in zip(names, dims):
        key, kw, kb = jax.random.split(key, 3)
        bound = 1.0 / (fan_in ** 0.5)
        w = jax.random.uniform(kw, (fan_out, fan_in), jnp.float32, -bound, bound)
        b = jax.random.uniform(kb, (fan_out,), jnp.float32, -bound, bound)
        params[name] = (w, b)
    return params


if __name__ == "__main__":
    key = jax.random.PRNGKey(0)
    kp, kx = jax.random.split(key)
    params = init_params(kp)

    # B deliberately not a power of two; with tb>=B it is a single grid step,
    # no padding and no output slice.
    B = 1000
    x = jax.random.normal(kx, (B, 19), jnp.float32)

    # Collapse the activation-free linear chain once (outside the hot path).
    wc, bc = collapse_params(params)
    wc, bc = jax.block_until_ready((wc, bc))

    fwd = jax.jit(lambda xx, ww, bb: autoencoder_forward(xx, ww, bb, tb=8192))
    out = jax.block_until_ready(fwd(x, wc, bc))

    ref = reference_forward(x, params)
    assert out.shape == (B, 19)
    # Collapsing the linears changes accumulation order slightly -> small tol.
    assert jnp.allclose(out, ref, atol=1e-5, rtol=1e-5), "mismatch vs JAX reference"

    print("KERNEL_OK")
</pallas_src>

<mosaic_0001>
module attributes {stable_mosaic.version = 11 : i64} {
  func.func @collapsed_mlp_kernel(%arg0: i32, %arg1: memref<1000x19xf32, #tpu.memory_space<vmem>>, %arg2: memref<19x19xf32, #tpu.memory_space<vmem>>, %arg3: memref<1x19xf32, #tpu.memory_space<vmem>>, %arg4: memref<1000x19xf32, #tpu.memory_space<vmem>>) attributes {dimension_semantics = [#tpu.dimension_semantics<parallel>], iteration_bounds = array<i64: 1>, scalar_prefetch = 0 : i64, scratch_operands = 0 : i64, tpu.core_type = #tpu.core_type<tc>, window_params = [{transform_indices = @transform_0, window_bounds = array<i64: 1000, 19>}, {pipeline_mode = #tpu.pipeline_mode<synchronous>, transform_indices = @transform_1, window_bounds = array<i64: 19, 19>}, {pipeline_mode = #tpu.pipeline_mode<synchronous>, transform_indices = @transform_2, window_bounds = array<i64: 1, 19>}, {transform_indices = @transform_3, window_bounds = array<i64: 1000, 19>}]} {
    %c0 = arith.constant 0 : index
    %c0_0 = arith.constant 0 : index
    %0 = vector.load %arg1[%c0, %c0_0] : memref<1000x19xf32, #tpu.memory_space<vmem>>, vector<1000x19xf32>
    %c0_1 = arith.constant 0 : index
    %c0_2 = arith.constant 0 : index
    %1 = vector.load %arg2[%c0_1, %c0_2] : memref<19x19xf32, #tpu.memory_space<vmem>>, vector<19x19xf32>
    %cst = arith.constant dense<0.000000e+00> : vector<1000x19xf32>
    %2 = tpu.matmul %0, %1, %cst {dimension_numbers = #tpu.dot_dimension_numbers<[1], [0], [0], [1], [0, 0, 1, 1], [], []>} : vector<1000x19xf32>, vector<19x19xf32>, vector<1000x19xf32> -> vector<1000x19xf32>
    %c0_3 = arith.constant 0 : index
    %c0_4 = arith.constant 0 : index
    %3 = vector.load %arg3[%c0_3, %c0_4] : memref<1x19xf32, #tpu.memory_space<vmem>>, vector<1x19xf32>
    %4 = vector.broadcast %3 : vector<1x19xf32> to vector<1000x19xf32>
    %5 = arith.addf %2, %4 : vector<1000x19xf32>
    %6 = arith.negf %5 : vector<1000x19xf32>
    %7 = math.exp %6 : vector<1000x19xf32>
    %cst_5 = arith.constant 1.000000e+00 : f32
    %8 = vector.broadcast %cst_5 : f32 to vector<1000x19xf32>
    %9 = arith.addf %8, %7 : vector<1000x19xf32>
    %10 = arith.divf %8, %9 : vector<1000x19xf32>
    %c0_6 = arith.constant 0 : index
    %c0_7 = arith.constant 0 : index
    %11 = vector.load %arg4[%c0_6, %c0_7] : memref<1000x19xf32, #tpu.memory_space<vmem>>, vector<1000x19xf32>
    tpu.vector_store %arg4[%c0_6, %c0_7], %10 {strides = array<i32>} : memref<1000x19xf32, #tpu.memory_space<vmem>>, vector<1000x19xf32>,
    return
  }
  func.func @transform_0(%arg0: i32) -> (i32, i32) {
    %c0_i32 = arith.constant 0 : i32
    %c0_i32_0 = arith.constant 0 : i32
    return %arg0, %c0_i32 : i32, i32
  }
  func.func @transform_1(%arg0: i32) -> (i32, i32) {
    %c0_i32 = arith.constant 0 : i32
    %c0_i32_0 = arith.constant 0 : i32
    %c0_i32_1 = arith.constant 0 : i32
    return %c0_i32, %c0_i32_0 : i32, i32
  }
  func.func @transform_2(%arg0: i32) -> (i32, i32) {
    %c0_i32 = arith.constant 0 : i32
    %c0_i32_0 = arith.constant 0 : i32
    %c0_i32_1 = arith.constant 0 : i32
    return %c0_i32, %c0_i32_0 : i32, i32
  }
  func.func @transform_3(%arg0: i32) -> (i32, i32) {
    %c0_i32 = arith.constant 0 : i32
    %c0_i32_0 = arith.constant 0 : i32
    return %arg0, %c0_i32 : i32, i32
  }
}

</mosaic_0001>

<bundles_post_ra>
// kernel: _lambda_.1
= control target key start
LH: loop header
LB: loop body
LE: loop exit
PB: predicated region body
PF: predicated region fallthrough
CT: control target
= control target key end

     0   :  { %v3371_v0 = vmov 0.0|0.0   ;;  %vm3372_vm0 = vmmov 0   ;;  %v3373_v4 = vmov 0.0   ;;  %vm525_vm1 = vcmask 1042432   ;;  %s4795_s1 = inlined_call_operand.vmem [shape: f32[19,19], index: 1, kind: input, shape index: {}]   ;;  %s4796_s0 = inlined_call_operand.vmem [shape: f32[1000,19], index: 0, kind: input, shape index: {}]   ;;  %s4797_s2 = inlined_call_operand.vmem [shape: f32[1,19], index: 2, kind: input, shape index: {}]   ;;  %s4798_s3 = inlined_call_operand.vmem [shape: f32[1000,19], index: 3, kind: output, shape index: {}]  }
   0x1   :  { %2859 = vmatprep.subr.bf16.mxu0 %v3371_v0  ;;  %v139_v1 = vld [vmem:[%s4795_s1] sm:$0xff]  ;;  %v140_v2 = vld [vmem:[%s4795_s1 + $0x8] sm:$0xff]  ;;  %2862 = vmatprep.subr.bf16.mxu1 %v3371_v0  ;;  %v141_v5 = vld [vmem:[%s4795_s1 + $0x10] sm:$0x7]  ;;  %vm149_vm2 = vcmask 154624  }
   0x2   :  { %v2860_v3 = vpack.c.bf16 %v140_v2, %v139_v1  ;;  %2484 = vmatprep.mubr.msk.f32.mxu0 %vm3372_vm0, %v3373_v4  ;;  %2673 = vmatprep.mubr.msk.f32.mxu1 %vm3372_vm0, %v3373_v4  ;;  %v14_v6 = vld [vmem:[%s4796_s0] sm:$0xff]  ;;  %v77_v7 = vld [vmem:[%s4796_s0 + $0x1f8] sm:$0xff]  ;;  %v15_v8 = vld [vmem:[%s4796_s0 + $0x8] sm:$0xff] }
   0x3   :  { %v78_v9 = vld [vmem:[%s4796_s0 + $0x200] sm:$0xff]  ;;  %v16_v10 = vld [vmem:[%s4796_s0 + $0x10] sm:$0xff]  ;;  %v79_v11 = vld [vmem:[%s4796_s0 + $0x208] sm:$0xff] }
   0x4   :  { %2861 = vmatpush3.bf16.msra.mxu0 %v2860_v3  ;;  %2864 = vmatpush3.bf16.msra.mxu1 %v2860_v3  ;;  %v17_v12 = vld [vmem:[%s4796_s0 + $0x18] sm:$0xff]  ;;  %v80_v13 = vld [vmem:[%s4796_s0 + $0x210] sm:$0xff]  ;;  %v18_v14 = vld [vmem:[%s4796_s0 + $0x20] sm:$0xff] }
   0x5   :  { %2482 = vmatprep.subr.mxu0 %v3373_v4  ;;  %2863 = vmatprep.subr.mxu1 %v3373_v4  ;;  %v81_v15 = vld [vmem:[%s4796_s0 + $0x218] sm:$0xff]  ;;  %v19_v16 = vld [vmem:[%s4796_s0 + $0x28] sm:$0xff]  ;;  %v82_v17 = vld [vmem:[%s4796_s0 + $0x220] sm:$0xff] }
   0x6   :  { %v20_v18 = vld [vmem:[%s4796_s0 + $0x30] sm:$0xff]  ;;  %v83_v19 = vld [vmem:[%s4796_s0 + $0x228] sm:$0xff]  ;;  %v21_v20 = vld [vmem:[%s4796_s0 + $0x38] sm:$0xff] }
   0x7   :  { %v84_v21 = vld [vmem:[%s4796_s0 + $0x230] sm:$0xff]  ;;  %v22_v22 = vld [vmem:[%s4796_s0 + $0x40] sm:$0xff]  ;;  %v85_v23 = vld [vmem:[%s4796_s0 + $0x238] sm:$0xff] }
   0x8   :  { %2483 = vmatpush3.msk.msra.mxu0 %vm525_vm1, %v141_v5  ;;  %2865 = vmatpush3.msk.msra.mxu1 %vm525_vm1, %v141_v5  ;;  %v23_v24 = vld [vmem:[%s4796_s0 + $0x48] sm:$0xff]  ;;  %v86_v25 = vld [vmem:[%s4796_s0 + $0x240] sm:$0xff]  ;;  %v24_v26 = vld [vmem:[%s4796_s0 + $0x50] sm:$0xff] }
   0x9   :  { %2485 = vmatmul.mubr.msk.f32.vlgmr.msra.gmra.mrb[0].mxu0 %vm149_vm2, %v14_v6  ;;  %2674 = vmatmul.mubr.msk.f32.vlgmr.msra.gmra.mrb[0].mxu1 %vm149_vm2, %v77_v7  ;;  %v87_v27 = vld [vmem:[%s4796_s0 + $0x248] sm:$0xff]  ;;  %v25_v28 = vld [vmem:[%s4796_s0 + $0x58] sm:$0xff]  ;;  %v88_v29 = vld [vmem:[%s4796_s0 + $0x250] sm:$0xff] }
   0xa   :  { %2487 = vmatprep.mubr.msk.f32.mxu0 %vm3372_vm0, %v3373_v4  ;;  %2676 = vmatprep.mubr.msk.f32.mxu1 %vm3372_vm0, %v3373_v4  ;;  %v26_v30 = vld [vmem:[%s4796_s0 + $0x60] sm:$0xff]  ;;  %v89_v31 = vld [vmem:[%s4796_s0 + $0x258] sm:$0xff]  ;;  %v27_v32 = vld [vmem:[%s4796_s0 + $0x68] sm:$0xff] }
   0xb   :  { %v90_v33 = vld [vmem:[%s4796_s0 + $0x260] sm:$0xff]  ;;  %v28_v34 = vld [vmem:[%s4796_s0 + $0x70] sm:$0xff]  ;;  %v91_v35 = vld [vmem:[%s4796_s0 + $0x268] sm:$0xff] }
   0xc   :  { %v29_v36 = vld [vmem:[%s4796_s0 + $0x78] sm:$0xff]  ;;  %v92_v37 = vld [vmem:[%s4796_s0 + $0x270] sm:$0xff]  ;;  %v30_v38 = vld [vmem:[%s4796_s0 + $0x80] sm:$0xff] }
   0xd   :  { %2488 = vmatmul.mubr.msk.f32.gmra.mrb[2].mxu0 %vm149_vm2, %v15_v8  ;;  %2677 = vmatmul.mubr.msk.f32.gmra.mrb[2].mxu1 %vm149_vm2, %v78_v9  ;;  %v93_v39 = vld [vmem:[%s4796_s0 + $0x278] sm:$0xff]  ;;  %v31_v40 = vld [vmem:[%s4796_s0 + $0x88] sm:$0xff]  ;;  %v94_v41 = vld [vmem:[%s4796_s0 + $0x280] sm:$0xff] }
   0xe   :  { %2490 = vmatprep.mubr.msk.f32.mxu0 %vm3372_vm0, %v3373_v4  ;;  %2679 = vmatprep.mubr.msk.f32.mxu1 %vm3372_vm0, %v3373_v4  ;;  %v32_v42 = vld [vmem:[%s4796_s0 + $0x90] sm:$0xff]  ;;  %v95_v43 = vld [vmem:[%s4796_s0 + $0x288] sm:$0xff]  ;;  %v33_v44 = vld [vmem:[%s4796_s0 + $0x98] sm:$0xff] }
   0xf   :  { %v96_v45 = vld [vmem:[%s4796_s0 + $0x290] sm:$0xff]  ;;  %v34_v46 = vld [vmem:[%s4796_s0 + $0xa0] sm:$0xff]  ;;  %v97_v47 = vld [vmem:[%s4796_s0 + $0x298] sm:$0xff] }
  0x10   :  { %v35_v48 = vld [vmem:[%s4796_s0 + $0xa8] sm:$0xff]  ;;  %v98_v49 = vld [vmem:[%s4796_s0 + $0x2a0] sm:$0xff]  ;;  %v36_v50 = vld [vmem:[%s4796_s0 + $0xb0] sm:$0xff] }
  0x11   :  { %2491 = vmatmul.mubr.msk.f32.gmra.mrb[4].mxu0 %vm149_vm2, %v16_v10  ;;  %2680 = vmatmul.mubr.msk.f32.gmra.mrb[4].mxu1 %vm149_vm2, %v79_v11  ;;  %v99_v51 = vld [vmem:[%s4796_s0 + $0x2a8] sm:$0xff]  ;;  %v37_v52 = vld [vmem:[%s4796_s0 + $0xb8] sm:$0xff]  ;;  %v100_v53 = vld [vmem:[%s4796_s0 + $0x2b0] sm:$0xff] }
  0x12   :  { %2493 = vmatprep.mubr.msk.f32.mxu0 %vm3372_vm0, %v3373_v4  ;;  %2682 = vmatprep.mubr.msk.f32.mxu1 %vm3372_vm0, %v3373_v4  ;;  %v38_v54 = vld [vmem:[%s4796_s0 + $0xc0] sm:$0xff]  ;;  %v101_v55 = vld [vmem:[%s4796_s0 + $0x2b8] sm:$0xff]  ;;  %v39_v56 = vld [vmem:[%s4796_s0 + $0xc8] sm:$0xff] }
  0x13   :  { %v102_v57 = vld [vmem:[%s4796_s0 + $0x2c0] sm:$0xff]  ;;  %v40_v58 = vld [vmem:[%s4796_s0 + $0xd0] sm:$0xff]  ;;  %v103_v59 = vld [vmem:[%s4796_s0 + $0x2c8] sm:$0xff] }
  0x14   :  { %v41_v60 = vld [vmem:[%s4796_s0 + $0xd8] sm:$0xff]  ;;  %v104_v61 = vld [vmem:[%s4796_s0 + $0x2d0] sm:$0xff]  ;;  %v42_v62 = vld [vmem:[%s4796_s0 + $0xe0] sm:$0xff] }
  0x15   :  { %2494 = vmatmul.mubr.msk.f32.gmra.mrb[6].mxu0 %vm149_vm2, %v17_v12  ;;  %2683 = vmatmul.mubr.msk.f32.gmra.mrb[6].mxu1 %vm149_vm2, %v80_v13  ;;  %v105_v63 = vld [vmem:[%s4796_s0 + $0x2d8] sm:$0xff]  ;;  %v43_v0 = vld [vmem:[%s4796_s0 + $0xe8] sm:$0xff]  ;;  %v106_v1 = vld [vmem:[%s4796_s0 + $0x2e0] sm:$0xff] }
  0x16   :  { %2496 = vmatprep.mubr.msk.f32.mxu0 %vm3372_vm0, %v3373_v4  ;;  %2685 = vmatprep.mubr.msk.f32.mxu1 %vm3372_vm0, %v3373_v4  ;;  %v44_v2 = vld [vmem:[%s4796_s0 + $0xf0] sm:$0xff]  ;;  %v107_v3 = vld [vmem:[%s4796_s0 + $0x2e8] sm:$0xff]  ;;  %v45_v5 = vld [vmem:[%s4796_s0 + $0xf8] sm:$0xff] }
  0x17   :  { %v108_v6 = vld [vmem:[%s4796_s0 + $0x2f0] sm:$0xff]  ;;  %v46_v7 = vld [vmem:[%s4796_s0 + $0x100] sm:$0xff]  ;;  %v109_v8 = vld [vmem:[%s4796_s0 + $0x2f8] sm:$0xff] }
  0x18   :  { %v47_v9 = vld [vmem:[%s4796_s0 + $0x108] sm:$0xff]  ;;  %v110_v10 = vld [vmem:[%s4796_s0 + $0x300] sm:$0xff]  ;;  %v48_v11 = vld [vmem:[%s4796_s0 + $0x110] sm:$0xff] }
  0x19   :  { %2497 = vmatmul.mubr.msk.f32.gmra.mrb[8].mxu0 %vm149_vm2, %v18_v14  ;;  %2686 = vmatmul.mubr.msk.f32.gmra.mrb[8].mxu1 %vm149_vm2, %v81_v15  ;;  %v111_v12 = vld [vmem:[%s4796_s0 + $0x308] sm:$0xff]  ;;  %v49_v13 = vld [vmem:[%s4796_s0 + $0x118] sm:$0xff]  ;;  %v112_v14 = vld [vmem:[%s4796_s0 + $0x310] sm:$0xff] }
  0x1a   :  { %2499 = vmatprep.mubr.msk.f32.mxu0 %vm3372_vm0, %v3373_v4  ;;  %2688 = vmatprep.mubr.msk.f32.mxu1 %vm3372_vm0, %v3373_v4  ;;  %v50_v15 = vld [vmem:[%s4796_s0 + $0x120] sm:$0xff] }
  0x1d   :  { %2500 = vmatmul.mubr.msk.f32.gmra.mrb[10].mxu0 %vm149_vm2, %v19_v16  ;;  %2689 = vmatmul.mubr.msk.f32.gmra.mrb[10].mxu1 %vm149_vm2, %v82_v17  ;;  %v113_v16 = vld [vmem:[%s4796_s0 + $0x318] sm:$0xff]  ;;  %v51_v17 = vld [vmem:[%s4796_s0 + $0x128] sm:$0xff] }
  0x1e   :  { %2502 = vmatprep.mubr.msk.f32.mxu0 %vm3372_vm0, %v3373_v4  ;;  %2691 = vmatprep.mubr.msk.f32.mxu1 %vm3372_vm0, %v3373_v4 }
  0x21   :  { %2503 = vmatmul.mubr.msk.f32.gmra.mrb[12].mxu0 %vm149_vm2, %v20_v18  ;;  %2692 = vmatmul.mubr.msk.f32.gmra.mrb[12].mxu1 %vm149_vm2, %v83_v19  ;;  %v114_v18 = vld [vmem:[%s4796_s0 + $0x320] sm:$0xff]  ;;  %v52_v19 = vld [vmem:[%s4796_s0 + $0x130] sm:$0xff] }
  0x22   :  { %2505 = vmatprep.mubr.msk.f32.mxu0 %vm3372_vm0, %v3373_v4  ;;  %2694 = vmatprep.mubr.msk.f32.mxu1 %vm3372_vm0, %v3373_v4 }
  0x25   :  { %2506 = vmatmul.mubr.msk.f32.gmra.mrb[14].mxu0 %vm149_vm2, %v21_v20  ;;  %2695 = vmatmul.mubr.msk.f32.gmra.mrb[14].mxu1 %vm149_vm2, %v84_v21  ;;  %v115_v20 = vld [vmem:[%s4796_s0 + $0x328] sm:$0xff]  ;;  %v53_v21 = vld [vmem:[%s4796_s0 + $0x138] sm:$0xff] }
  0x26   :  { %2508 = vmatprep.mubr.msk.f32.mxu0 %vm3372_vm0, %v3373_v4  ;;  %2697 = vmatprep.mubr.msk.f32.mxu1 %vm3372_vm0, %v3373_v4 }
  0x29   :  { %2509 = vmatmul.mubr.msk.f32.gmra.mrb[16].mxu0 %vm149_vm2, %v22_v22  ;;  %2698 = vmatmul.mubr.msk.f32.gmra.mrb[16].mxu1 %vm149_vm2, %v85_v23  ;;  %v116_v22 = vld [vmem:[%s4796_s0 + $0x330] sm:$0xff]  ;;  %v54_v23 = vld [vmem:[%s4796_s0 + $0x140] sm:$0xff] }
  0x2a   :  { %2511 = vmatprep.mubr.msk.f32.mxu0 %vm3372_vm0, %v3373_v4  ;;  %2700 = vmatprep.mubr.msk.f32.mxu1 %vm3372_vm0, %v3373_v4 }
  0x2d   :  { %2512 = vmatmul.mubr.msk.f32.gmra.mrb[18].mxu0 %vm149_vm2, %v23_v24  ;;  %2701 = vmatmul.mubr.msk.f32.gmra.mrb[18].mxu1 %vm149_vm2, %v86_v25  ;;  %v117_v24 = vld [vmem:[%s4796_s0 + $0x338] sm:$0xff]  ;;  %v55_v25 = vld [vmem:[%s4796_s0 + $0x148] sm:$0xff] }
  0x2e   :  { %2514 = vmatprep.mubr.msk.f32.mxu0 %vm3372_vm0, %v3373_v4  ;;  %2703 = vmatprep.mubr.msk.f32.mxu1 %vm3372_vm0, %v3373_v4 }
  0x31   :  { %2515 = vmatmul.mubr.msk.f32.gmra.mrb[20].mxu0 %vm149_vm2, %v24_v26  ;;  %2704 = vmatmul.mubr.msk.f32.gmra.mrb[20].mxu1 %vm149_vm2, %v87_v27  ;;  %v118_v26 = vld [vmem:[%s4796_s0 + $0x340] sm:$0xff]  ;;  %v56_v27 = vld [vmem:[%s4796_s0 + $0x150] sm:$0xff] }
  0x32   :  { %2517 = vmatprep.mubr.msk.f32.mxu0 %vm3372_vm0, %v3373_v4  ;;  %2706 = vmatprep.mubr.msk.f32.mxu1 %vm3372_vm0, %v3373_v4 }
  0x35   :  { %2518 = vmatmul.mubr.msk.f32.gmra.mrb[22].mxu0 %vm149_vm2, %v25_v28  ;;  %2707 = vmatmul.mubr.msk.f32.gmra.mrb[22].mxu1 %vm149_vm2, %v88_v29  ;;  %v119_v28 = vld [vmem:[%s4796_s0 + $0x348] sm:$0xff]  ;;  %v57_v29 = vld [vmem:[%s4796_s0 + $0x158] sm:$0xff] }
  0x36   :  { %2520 = vmatprep.mubr.msk.f32.mxu0 %vm3372_vm0, %v3373_v4  ;;  %2709 = vmatprep.mubr.msk.f32.mxu1 %vm3372_vm0, %v3373_v4 }
  0x39   :  { %2521 = vmatmul.mubr.msk.f32.gmra.mrb[24].mxu0 %vm149_vm2, %v26_v30  ;;  %2710 = vmatmul.mubr.msk.f32.gmra.mrb[24].mxu1 %vm149_vm2, %v89_v31  ;;  %v120_v30 = vld [vmem:[%s4796_s0 + $0x350] sm:$0xff]  ;;  %v58_v31 = vld [vmem:[%s4796_s0 + $0x160] sm:$0xff] }
  0x3a   :  { %2523 = vmatprep.mubr.msk.f32.mxu0 %vm3372_vm0, %v3373_v4  ;;  %2712 = vmatprep.mubr.msk.f32.mxu1 %vm3372_vm0, %v3373_v4 }
  0x3d   :  { %2524 = vmatmul.mubr.msk.f32.gmra.mrb[26].mxu0 %vm149_vm2, %v27_v32  ;;  %2713 = vmatmul.mubr.msk.f32.gmra.mrb[26].mxu1 %vm149_vm2, %v90_v33  ;;  %v121_v32 = vld [vmem:[%s4796_s0 + $0x358] sm:$0xff]  ;;  %v59_v33 = vld [vmem:[%s4796_s0 + $0x168] sm:$0xff] }
  0x3e   :  { %2526 = vmatprep.mubr.msk.f32.mxu0 %vm3372_vm0, %v3373_v4  ;;  %2715 = vmatprep.mubr.msk.f32.mxu1 %vm3372_vm0, %v3373_v4 }
  0x41   :  { %2527 = vmatmul.mubr.msk.f32.gmra.mrb[28].mxu0 %vm149_vm2, %v28_v34  ;;  %2716 = vmatmul.mubr.msk.f32.gmra.mrb[28].mxu1 %vm149_vm2, %v91_v35  ;;  %v122_v34 = vld [vmem:[%s4796_s0 + $0x360] sm:$0xff]  ;;  %v60_v35 = vld [vmem:[%s4796_s0 + $0x170] sm:$0xff] }
  0x42   :  { %2529 = vmatprep.mubr.msk.f32.mxu0 %vm3372_vm0, %v3373_v4  ;;  %2718 = vmatprep.mubr.msk.f32.mxu1 %vm3372_vm0, %v3373_v4 }
  0x45   :  { %2530 = vmatmul.mubr.msk.f32.gmra.mrb[30].mxu0 %vm149_vm2, %v29_v36  ;;  %2719 = vmatmul.mubr.msk.f32.gmra.mrb[30].mxu1 %vm149_vm2, %v92_v37  ;;  %v123_v36 = vld [vmem:[%s4796_s0 + $0x368] sm:$0xff]  ;;  %v61_v37 = vld [vmem:[%s4796_s0 + $0x178] sm:$0xff] }
  0x46   :  { %2532 = vmatprep.mubr.msk.f32.mxu0 %vm3372_vm0, %v3373_v4  ;;  %2721 = vmatprep.mubr.msk.f32.mxu1 %vm3372_vm0, %v3373_v4 }
  0x49   :  { %2533 = vmatmul.mubr.msk.f32.gmra.mrb[32].mxu0 %vm149_vm2, %v30_v38  ;;  %2722 = vmatmul.mubr.msk.f32.gmra.mrb[32].mxu1 %vm149_vm2, %v93_v39  ;;  %v124_v38 = vld [vmem:[%s4796_s0 + $0x370] sm:$0xff]  ;;  %v62_v39 = vld [vmem:[%s4796_s0 + $0x180] sm:$0xff] }
  0x4a   :  { %2535 = vmatprep.mubr.msk.f32.mxu0 %vm3372_vm0, %v3373_v4  ;;  %2724 = vmatprep.mubr.msk.f32.mxu1 %vm3372_vm0, %v3373_v4 }
  0x4d   :  { %2536 = vmatmul.mubr.msk.f32.gmra.mrb[34].mxu0 %vm149_vm2, %v31_v40  ;;  %2725 = vmatmul.mubr.msk.f32.gmra.mrb[34].mxu1 %vm149_vm2, %v94_v41  ;;  %v125_v40 = vld [vmem:[%s4796_s0 + $0x378] sm:$0xff]  ;;  %v63_v41 = vld [vmem:[%s4796_s0 + $0x188] sm:$0xff] }
  0x4e   :  { %2538 = vmatprep.mubr.msk.f32.mxu0 %vm3372_vm0, %v3373_v4  ;;  %2727 = vmatprep.mubr.msk.f32.mxu1 %vm3372_vm0, %v3373_v4 }
  0x51   :  { %2539 = vmatmul.mubr.msk.f32.gmra.mrb[36].mxu0 %vm149_vm2, %v32_v42  ;;  %2728 = vmatmul.mubr.msk.f32.gmra.mrb[36].mxu1 %vm149_vm2, %v95_v43  ;;  %v126_v42 = vld [vmem:[%s4796_s0 + $0x380] sm:$0xff]  ;;  %v64_v43 = vld [vmem:[%s4796_s0 + $0x190] sm:$0xff] }
  0x52   :  { %2541 = vmatprep.mubr.msk.f32.mxu0 %vm3372_vm0, %v3373_v4  ;;  %2730 = vmatprep.mubr.msk.f32.mxu1 %vm3372_vm0, %v3373_v4 }
  0x55   :  { %2542 = vmatmul.mubr.msk.f32.gmra.mrb[38].mxu0 %vm149_vm2, %v33_v44  ;;  %2731 = vmatmul.mubr.msk.f32.gmra.mrb[38].mxu1 %vm149_vm2, %v96_v45  ;;  %v127_v44 = vld [vmem:[%s4796_s0 + $0x388] sm:$0xff]  ;;  %v65_v45 = vld [vmem:[%s4796_s0 + $0x198] sm:$0xff] }
  0x56   :  { %2544 = vmatprep.mubr.msk.f32.mxu0 %vm3372_vm0, %v3373_v4  ;;  %2733 = vmatprep.mubr.msk.f32.mxu1 %vm3372_vm0, %v3373_v4 }
  0x59   :  { %2545 = vmatmul.mubr.msk.f32.gmra.mrb[40].mxu0 %vm149_vm2, %v34_v46  ;;  %2734 = vmatmul.mubr.msk.f32.gmra.mrb[40].mxu1 %vm149_vm2, %v97_v47  ;;  %v128_v46 = vld [vmem:[%s4796_s0 + $0x390] sm:$0xff]  ;;  %v66_v47 = vld [vmem:[%s4796_s0 + $0x1a0] sm:$0xff] }
  0x5a   :  { %2547 = vmatprep.mubr.msk.f32.mxu0 %vm3372_vm0, %v3373_v4  ;;  %2736 = vmatprep.mubr.msk.f32.mxu1 %vm3372_vm0, %v3373_v4 }
  0x5d   :  { %2548 = vmatmul.mubr.msk.f32.gmra.mrb[42].mxu0 %vm149_vm2, %v35_v48  ;;  %2737 = vmatmul.mubr.msk.f32.gmra.mrb[42].mxu1 %vm149_vm2, %v98_v49  ;;  %v129_v48 = vld [vmem:[%s4796_s0 + $0x398] sm:$0xff]  ;;  %v4044_v49 = vld [vmem:[%s4797_s2] ss:$0 sm:$0xff] }
  0x5e   :  { %2550 = vmatprep.mubr.msk.f32.mxu0 %vm3372_vm0, %v3373_v4  ;;  %2739 = vmatprep.mubr.msk.f32.mxu1 %vm3372_vm0, %v3373_v4 }
  0x61   :  { %2551 = vmatmul.mubr.msk.f32.gmra.mrb[44].mxu0 %vm149_vm2, %v36_v50  ;;  %2740 = vmatmul.mubr.msk.f32.gmra.mrb[44].mxu1 %vm149_vm2, %v99_v51  ;;  %v67_v50 = vld [vmem:[%s4796_s0 + $0x1a8] sm:$0xff]  ;;  %v130_v51 = vld [vmem:[%s4796_s0 + $0x3a0] sm:$0xff] }
  0x62   :  { %2553 = vmatprep.mubr.msk.f32.mxu0 %vm3372_vm0, %v3373_v4  ;;  %2742 = vmatprep.mubr.msk.f32.mxu1 %vm3372_vm0, %v3373_v4 }
  0x65   :  { %2554 = vmatmul.mubr.msk.f32.gmra.mrb[46].mxu0 %vm149_vm2, %v37_v52  ;;  %2743 = vmatmul.mubr.msk.f32.gmra.mrb[46].mxu1 %vm149_vm2, %v100_v53 }
  0x66   :  { %2556 = vmatprep.mubr.msk.f32.mxu0 %vm3372_vm0, %v3373_v4  ;;  %2745 = vmatprep.mubr.msk.f32.mxu1 %vm3372_vm0, %v3373_v4 }
  0x69   :  { %2557 = vmatmul.mubr.msk.f32.gmra.mrb[48].mxu0 %vm149_vm2, %v38_v54  ;;  %2746 = vmatmul.mubr.msk.f32.gmra.mrb[48].mxu1 %vm149_vm2, %v101_v55 }
  0x6a   :  { %2559 = vmatprep.mubr.msk.f32.mxu0 %vm3372_vm0, %v3373_v4  ;;  %2748 = vmatprep.mubr.msk.f32.mxu1 %vm3372_vm0, %v3373_v4 }
  0x6d   :  { %2560 = vmatmul.mubr.msk.f32.gmra.mrb[50].mxu0 %vm149_vm2, %v39_v56  ;;  %2749 = vmatmul.mubr.msk.f32.gmra.mrb[50].mxu1 %vm149_vm2, %v102_v57 }
  0x6e   :  { %2562 = vmatprep.mubr.msk.f32.mxu0 %vm3372_vm0, %v3373_v4  ;;  %2751 = vmatprep.mubr.msk.f32.mxu1 %vm3372_vm0, %v3373_v4 }
  0x71   :  { %2563 = vmatmul.mubr.msk.f32.gmra.mrb[52].mxu0 %vm149_vm2, %v40_v58  ;;  %2752 = vmatmul.mubr.msk.f32.gmra.mrb[52].mxu1 %vm149_vm2, %v103_v59  ;;  %v68_v58 = vld [vmem:[%s4796_s0 + $0x1b0] sm:$0xff]  ;;  %v131_v59 = vld [vmem:[%s4796_s0 + $0x3a8] sm:$0xff] }
  0x72   :  { %2565 = vmatprep.mubr.msk.f32.mxu0 %vm3372_vm0, %v3373_v4  ;;  %2754 = vmatprep.mubr.msk.f32.mxu1 %vm3372_vm0, %v3373_v4 }
  0x75   :  { %2566 = vmatmul.mubr.msk.f32.gmra.mrb[54].mxu0 %vm149_vm2, %v41_v60  ;;  %2755 = vmatmul.mubr.msk.f32.gmra.mrb[54].mxu1 %vm149_vm2, %v104_v61 }
  0x76   :  { %2568 = vmatprep.mubr.msk.f32.mxu0 %vm3372_vm0, %v3373_v4  ;;  %2757 = vmatprep.mubr.msk.f32.mxu1 %vm3372_vm0, %v3373_v4 }
  0x79   :  { %2569 = vmatmul.mubr.msk.f32.gmra.mrb[56].mxu0 %vm149_vm2, %v42_v62  ;;  %2758 = vmatmul.mubr.msk.f32.gmra.mrb[56].mxu1 %vm149_vm2, %v105_v63 }
  0x7a   :  { %2571 = vmatprep.mubr.msk.f32.mxu0 %vm3372_vm0, %v3373_v4  ;;  %2760 = vmatprep.mubr.msk.f32.mxu1 %vm3372_vm0, %v3373_v4 }
  0x7d   :  { %2572 = vmatmul.mubr.msk.f32.gmra.mrb[58].mxu0 %vm149_vm2, %v43_v0  ;;  %2761 = vmatmul.mubr.msk.f32.gmra.mrb[58].mxu1 %vm149_vm2, %v106_v1 }
  0x7e   :  { %2574 = vmatprep.mubr.msk.f32.mxu0 %vm3372_vm0, %v3373_v4  ;;  %2763 = vmatprep.mubr.msk.f32.mxu1 %vm3372_vm0, %v3373_v4 }
  0x81   :  { %2575 = vmatmul.mubr.msk.f32.gmra.mrb[60].mxu0 %vm149_vm2, %v44_v2  ;;  %2764 = vmatmul.mubr.msk.f32.gmra.mrb[60].mxu1 %vm149_vm2, %v107_v3 }
  0x82   :  { %2577 = vmatprep.mubr.msk.f32.mxu0 %vm3372_vm0, %v3373_v4  ;;  %2766 = vmatprep.mubr.msk.f32.mxu1 %vm3372_vm0, %v3373_v4 }
  0x85   :  { %2578 = vmatmul.mubr.msk.f32.gmra.mrb[62].mxu0 %vm149_vm2, %v45_v5  ;;  %2767 = vmatmul.mubr.msk.f32.gmra.mrb[62].mxu1 %vm149_vm2, %v108_v6  ;;  %v69_v5 = vld [vmem:[%s4796_s0 + $0x1b8] sm:$0xff]  ;;  %v132_v6 = vld [vmem:[%s4796_s0 + $0x3b0] sm:$0xff] }
  0x86   :  { %2580 = vmatprep.mubr.msk.f32.mxu0 %vm3372_vm0, %v3373_v4  ;;  %2769 = vmatprep.mubr.msk.f32.mxu1 %vm3372_vm0, %v3373_v4 }
  0x89   :  { %2581 = vmatmul.mubr.msk.f32.gmra.mrb[64].mxu0 %vm149_vm2, %v46_v7  ;;  %2770 = vmatmul.mubr.msk.f32.gmra.mrb[64].mxu1 %vm149_vm2, %v109_v8 }
  0x8a   :  { %2583 = vmatprep.mubr.msk.f32.mxu0 %vm3372_vm0, %v3373_v4  ;;  %2772 = vmatprep.mubr.msk.f32.mxu1 %vm3372_vm0, %v3373_v4 }
  0x8d   :  { %2584 = vmatmul.mubr.msk.f32.gmra.mrb[66].mxu0 %vm149_vm2, %v47_v9  ;;  %2773 = vmatmul.mubr.msk.f32.gmra.mrb[66].mxu1 %vm149_vm2, %v110_v10 }
  0x8e   :  { %2586 = vmatprep.mubr.msk.f32.mxu0 %vm3372_vm0, %v3373_v4  ;;  %2775 = vmatprep.mubr.msk.f32.mxu1 %vm3372_vm0, %v3373_v4 }
  0x91   :  { %2587 = vmatmul.mubr.msk.f32.gmra.mrb[68].mxu0 %vm149_vm2, %v48_v11  ;;  %2776 = vmatmul.mubr.msk.f32.gmra.mrb[68].mxu1 %vm149_vm2, %v111_v12 }
  0x92   :  { %2589 = vmatprep.mubr.msk.f32.mxu0 %vm3372_vm0, %v3373_v4  ;;  %2778 = vmatprep.mubr.msk.f32.mxu1 %vm3372_vm0, %v3373_v4 }
  0x95   :  { %2590 = vmatmul.mubr.msk.f32.gmra.mrb[70].mxu0 %vm149_vm2, %v49_v13  ;;  %2779 = vmatmul.mubr.msk.f32.gmra.mrb[70].mxu1 %vm149_vm2, %v112_v14 }
  0x96   :  { %2592 = vmatprep.mubr.msk.f32.mxu0 %vm3372_vm0, %v3373_v4  ;;  %2781 = vmatprep.mubr.msk.f32.mxu1 %vm3372_vm0, %v3373_v4 }
  0x99   :  { %2593 = vmatmul.mubr.msk.f32.gmra.mrb[72].mxu0 %vm149_vm2, %v50_v15  ;;  %2782 = vmatmul.mubr.msk.f32.gmra.mrb[72].mxu1 %vm149_vm2, %v113_v16  ;;  %v70_v15 = vld [vmem:[%s4796_s0 + $0x1c0] sm:$0xff]  ;;  %v133_v16 = vld [vmem:[%s4796_s0 + $0x3b8] sm:$0xff] }
  0x9a   :  { %2595 = vmatprep.mubr.msk.f32.mxu0 %vm3372_vm0, %v3373_v4  ;;  %2784 = vmatprep.mubr.msk.f32.mxu1 %vm3372_vm0, %v3373_v4 }
  0x9d   :  { %2596 = vmatmul.mubr.msk.f32.gmra.mrb[74].mxu0 %vm149_vm2, %v51_v17  ;;  %2785 = vmatmul.mubr.msk.f32.gmra.mrb[74].mxu1 %vm149_vm2, %v114_v18 }
  0x9e   :  { %2598 = vmatprep.mubr.msk.f32.mxu0 %vm3372_vm0, %v3373_v4  ;;  %2787 = vmatprep.mubr.msk.f32.mxu1 %vm3372_vm0, %v3373_v4 }
  0xa1   :  { %2599 = vmatmul.mubr.msk.f32.gmra.mrb[76].mxu0 %vm149_vm2, %v52_v19  ;;  %2788 = vmatmul.mubr.msk.f32.gmra.mrb[76].mxu1 %vm149_vm2, %v115_v20 }
  0xa2   :  { %2601 = vmatprep.mubr.msk.f32.mxu0 %vm3372_vm0, %v3373_v4  ;;  %2790 = vmatprep.mubr.msk.f32.mxu1 %vm3372_vm0, %v3373_v4 }
  0xa5   :  { %2602 = vmatmul.mubr.msk.f32.gmra.mrb[78].mxu0 %vm149_vm2, %v53_v21  ;;  %2791 = vmatmul.mubr.msk.f32.gmra.mrb[78].mxu1 %vm149_vm2, %v116_v22 }
  0xa6   :  { %2604 = vmatprep.mubr.msk.f32.mxu0 %vm3372_vm0, %v3373_v4  ;;  %2793 = vmatprep.mubr.msk.f32.mxu1 %vm3372_vm0, %v3373_v4 }
  0xa9   :  { %2605 = vmatmul.mubr.msk.f32.gmra.mrb[80].mxu0 %vm149_vm2, %v54_v23  ;;  %2794 = vmatmul.mubr.msk.f32.gmra.mrb[80].mxu1 %vm149_vm2, %v117_v24 }
  0xaa   :  { %2607 = vmatprep.mubr.msk.f32.mxu0 %vm3372_vm0, %v3373_v4  ;;  %2796 = vmatprep.mubr.msk.f32.mxu1 %vm3372_vm0, %v3373_v4 }
  0xad   :  { %2608 = vmatmul.mubr.msk.f32.gmra.mrb[82].mxu0 %vm149_vm2, %v55_v25  ;;  %2797 = vmatmul.mubr.msk.f32.gmra.mrb[82].mxu1 %vm149_vm2, %v118_v26  ;;  %v71_v25 = vld [vmem:[%s4796_s0 + $0x1c8] sm:$0xff]  ;;  %v134_v26 = vld [vmem:[%s4796_s0 + $0x3c0] sm:$0xff] }
  0xae   :  { %2610 = vmatprep.mubr.msk.f32.mxu0 %vm3372_vm0, %v3373_v4  ;;  %2799 = vmatprep.mubr.msk.f32.mxu1 %vm3372_vm0, %v3373_v4 }
  0xb1   :  { %2611 = vmatmul.mubr.msk.f32.gmra.mrb[84].mxu0 %vm149_vm2, %v56_v27  ;;  %2800 = vmatmul.mubr.msk.f32.gmra.mrb[84].mxu1 %vm149_vm2, %v119_v28 }
  0xb2   :  { %2613 = vmatprep.mubr.msk.f32.mxu0 %vm3372_vm0, %v3373_v4  ;;  %2802 = vmatprep.mubr.msk.f32.mxu1 %vm3372_vm0, %v3373_v4 }
  0xb5   :  { %2614 = vmatmul.mubr.msk.f32.gmra.mrb[86].mxu0 %vm149_vm2, %v57_v29  ;;  %2803 = vmatmul.mubr.msk.f32.gmra.mrb[86].mxu1 %vm149_vm2, %v120_v30 }
  0xb6   :  { %2616 = vmatprep.mubr.msk.f32.mxu0 %vm3372_vm0, %v3373_v4  ;;  %2805 = vmatprep.mubr.msk.f32.mxu1 %vm3372_vm0, %v3373_v4 }
  0xb9   :  { %2617 = vmatmul.mubr.msk.f32.gmra.mrb[88].mxu0 %vm149_vm2, %v58_v31  ;;  %2806 = vmatmul.mubr.msk.f32.gmra.mrb[88].mxu1 %vm149_vm2, %v121_v32 }
  0xba   :  { %2619 = vmatprep.mubr.msk.f32.mxu0 %vm3372_vm0, %v3373_v4  ;;  %2808 = vmatprep.mubr.msk.f32.mxu1 %vm3372_vm0, %v3373_v4 }
  0xbd   :  { %2620 = vmatmul.mubr.msk.f32.gmra.mrb[90].mxu0 %vm149_vm2, %v59_v33  ;;  %2809 = vmatmul.mubr.msk.f32.gmra.mrb[90].mxu1 %vm149_vm2, %v122_v34 }
  0xbe   :  { %2622 = vmatprep.mubr.msk.f32.mxu0 %vm3372_vm0, %v3373_v4  ;;  %2811 = vmatprep.mubr.msk.f32.mxu1 %vm3372_vm0, %v3373_v4 }
  0xc1   :  { %2623 = vmatmul.mubr.msk.f32.gmra.mrb[92].mxu0 %vm149_vm2, %v60_v35  ;;  %2812 = vmatmul.mubr.msk.f32.gmra.mrb[92].mxu1 %vm149_vm2, %v123_v36 }
  0xc2   :  { %2625 = vmatprep.mubr.msk.f32.mxu0 %vm3372_vm0, %v3373_v4  ;;  %2814 = vmatprep.mubr.msk.f32.mxu1 %vm3372_vm0, %v3373_v4 }
  0xc5   :  { %2626 = vmatmul.mubr.msk.f32.gmra.mrb[94].mxu0 %vm149_vm2, %v61_v37  ;;  %2815 = vmatmul.mubr.msk.f32.gmra.mrb[94].mxu1 %vm149_vm2, %v124_v38 }
  0xc6   :  { %2628 = vmatprep.mubr.msk.f32.mxu0 %vm3372_vm0, %v3373_v4  ;;  %2817 = vmatprep.mubr.msk.f32.mxu1 %vm3372_vm0, %v3373_v4 }
  0xc9   :  { %2629 = vmatmul.mubr.msk.f32.gmra.mrb[96].mxu0 %vm149_vm2, %v62_v39  ;;  %2818 = vmatmul.mubr.msk.f32.gmra.mrb[96].mxu1 %vm149_vm2, %v125_v40  ;;  %v72_v39 = vld [vmem:[%s4796_s0 + $0x1d0] sm:$0xff]  ;;  %v135_v40 = vld [vmem:[%s4796_s0 + $0x3c8] sm:$0xff] }
  0xca   :  { %2631 = vmatprep.mubr.msk.f32.mxu0 %vm3372_vm0, %v3373_v4  ;;  %2820 = vmatprep.mubr.msk.f32.mxu1 %vm3372_vm0, %v3373_v4 }
  0xcd   :  { %2632 = vmatmul.mubr.msk.f32.gmra.mrb[98].mxu0 %vm149_vm2, %v63_v41  ;;  %2821 = vmatmul.mubr.msk.f32.gmra.mrb[98].mxu1 %vm149_vm2, %v126_v42 }
  0xce   :  { %2634 = vmatprep.mubr.msk.f32.mxu0 %vm3372_vm0, %v3373_v4  ;;  %2823 = vmatprep.mubr.msk.f32.mxu1 %vm3372_vm0, %v3373_v4 }
  0xd1   :  { %2635 = vmatmul.mubr.msk.f32.gmra.mrb[100].mxu0 %vm149_vm2, %v64_v43  ;;  %2824 = vmatmul.mubr.msk.f32.gmra.mrb[100].mxu1 %vm149_vm2, %v127_v44 }
  0xd2   :  { %2637 = vmatprep.mubr.msk.f32.mxu0 %vm3372_vm0, %v3373_v4  ;;  %2826 = vmatprep.mubr.msk.f32.mxu1 %vm3372_vm0, %v3373_v4 }
  0xd5   :  { %2638 = vmatmul.mubr.msk.f32.gmra.mrb[102].mxu0 %vm149_vm2, %v65_v45  ;;  %2827 = vmatmul.mubr.msk.f32.gmra.mrb[102].mxu1 %vm149_vm2, %v128_v46 }
  0xd6   :  { %2640 = vmatprep.mubr.msk.f32.mxu0 %vm3372_vm0, %v3373_v4  ;;  %2829 = vmatprep.mubr.msk.f32.mxu1 %vm3372_vm0, %v3373_v4 }
  0xd9   :  { %2641 = vmatmul.mubr.msk.f32.gmra.mrb[104].mxu0 %vm149_vm2, %v66_v47  ;;  %2830 = vmatmul.mubr.msk.f32.gmra.mrb[104].mxu1 %vm149_vm2, %v129_v48 }
  0xda   :  { %2643 = vmatprep.mubr.msk.f32.mxu0 %vm3372_vm0, %v3373_v4  ;;  %2832 = vmatprep.mubr.msk.f32.mxu1 %vm3372_vm0, %v3373_v4 }
  0xdc   :  { %v595_v52 = vpop.f32.mrb[0].mxu0  ;;  %v910_v53 = vpop.f32.mrb[0].mxu1 }
  0xdd   :  { %v596_v54 = vadd.f32 %v4044_v49, %v595_v52  ;;  %v2486_v55 = vpop.f32.mrb[1].mxu0  ;;  %2644 = vmatmul.mubr.msk.f32.gmra.mrb[106].mxu0 %vm149_vm2, %v67_v50  ;;  %v911_v56 = vadd.f32 %v4044_v49, %v910_v53  ;;  %v2675_v57 = vpop.f32.mrb[1].mxu1  ;;  %2833 = vmatmul.mubr.msk.f32.gmra.mrb[106].mxu1 %vm149_vm2, %v130_v51 }
  0xde   :  { %2646 = vmatprep.mubr.msk.f32.mxu0 %vm3372_vm0, %v3373_v4  ;;  %2835 = vmatprep.mubr.msk.f32.mxu1 %vm3372_vm0, %v3373_v4  ;;  %v136_v55 = vld [vmem:[%s4796_s0 + $0x3d0] sm:$0xff] }
  0xdf   :  { %v2225_v60 = vmul.f32 -1.442695, %v596_v54  ;;  %v2288_v61 = vmul.f32 -1.442695, %v911_v56  ;;  %v73_v54 = vld [vmem:[%s4796_s0 + $0x1d8] sm:$0xff] }
  0xe0   :  { %v600_v62 = vpop.f32.mrb[2].mxu0  ;;  %v915_v63 = vpop.f32.mrb[2].mxu1 }
  0xe1   :  { %2869 = vpow2.f32 %v2225_v60  ;;  %v601_v0 = vadd.f32 %v4044_v49, %v600_v62  ;;  %v2489_v1 = vpop.f32.mrb[3].mxu0  ;;  %2647 = vmatmul.mubr.msk.f32.gmra.mrb[108].mxu0 %vm149_vm2, %v68_v58  ;;  %v916_v2 = vadd.f32 %v4044_v49, %v915_v63  ;;  %v2678_v3 = vpop.f32.mrb[3].mxu1  ;;  %2836 = vmatmul.mubr.msk.f32.gmra.mrb[108].mxu1 %vm149_vm2, %v131_v59 }
  0xe2   :  { %2871 = vpow2.f32 %v2288_v61  ;;  %2649 = vmatprep.mubr.msk.f32.mxu0 %vm3372_vm0, %v3373_v4  ;;  %2838 = vmatprep.mubr.msk.f32.mxu1 %vm3372_vm0, %v3373_v4 }
  0xe3   :  { %v2226_v7 = vmul.f32 -1.442695, %v601_v0  ;;  %v2289_v8 = vmul.f32 -1.442695, %v916_v2 }
  0xe4   :  { %v605_v9 = vpop.f32.mrb[4].mxu0  ;;  %v920_v10 = vpop.f32.mrb[4].mxu1 }
  0xe5   :  { %2873 = vpow2.f32 %v2226_v7  ;;  %v606_v11 = vadd.f32 %v4044_v49, %v605_v9  ;;  %v2492_v12 = vpop.f32.mrb[5].mxu0  ;;  %2650 = vmatmul.mubr.msk.f32.gmra.mrb[110].mxu0 %vm149_vm2, %v69_v5  ;;  %v921_v13 = vadd.f32 %v4044_v49, %v920_v10  ;;  %v2681_v14 = vpop.f32.mrb[5].mxu1  ;;  %2839 = vmatmul.mubr.msk.f32.gmra.mrb[110].mxu1 %vm149_vm2, %v132_v6  ;;  %v74_v5 = vld [vmem:[%s4796_s0 + $0x1e0] sm:$0xff]  ;;  %v137_v6 = vld [vmem:[%s4796_s0 + $0x3d8] sm:$0xff] }
  0xe6   :  { %2875 = vpow2.f32 %v2289_v8  ;;  %2652 = vmatprep.mubr.msk.f32.mxu0 %vm3372_vm0, %v3373_v4  ;;  %2841 = vmatprep.mubr.msk.f32.mxu1 %vm3372_vm0, %v3373_v4 }
  0xe7   :  { %v2227_v17 = vmul.f32 -1.442695, %v606_v11  ;;  %v2290_v18 = vmul.f32 -1.442695, %v921_v13 }
  0xe8   :  { %v610_v19 = vpop.f32.mrb[6].mxu0  ;;  %v925_v20 = vpop.f32.mrb[6].mxu1 }
  0xe9   :  { %2877 = vpow2.f32 %v2227_v17  ;;  %v611_v21 = vadd.f32 %v4044_v49, %v610_v19  ;;  %v2495_v22 = vpop.f32.mrb[7].mxu0  ;;  %2653 = vmatmul.mubr.msk.f32.gmra.mrb[112].mxu0 %vm149_vm2, %v70_v15  ;;  %v926_v23 = vadd.f32 %v4044_v49, %v925_v20  ;;  %v2684_v24 = vpop.f32.mrb[7].mxu1  ;;  %2842 = vmatmul.mubr.msk.f32.gmra.mrb[112].mxu1 %vm149_vm2, %v133_v16  ;;  %v75_v20 = vld [vmem:[%s4796_s0 + $0x1e8] sm:$0xff] }
  0xea   :  { %2879 = vpow2.f32 %v2290_v18  ;;  %2655 = vmatprep.mubr.msk.f32.mxu0 %vm3372_vm0, %v3373_v4  ;;  %2844 = vmatprep.mubr.msk.f32.mxu1 %vm3372_vm0, %v3373_v4 }
  0xeb   :  { %v2870_v27 = vpop.eup %2869  ;;  %v2228_v28 = vmul.f32 -1.442695, %v611_v21  ;;  %v2291_v31 = vmul.f32 -1.442695, %v926_v23  ;;  %v138_v21 = vld [vmem:[%s4796_s0 + $0x3e0] sm:$0xff] }
  0xec   :  { %v2872_v29 = vpop.eup %2871  ;;  %v1594_v30 = vadd.f32 1.0, %v2870_v27  ;;  %v615_v32 = vpop.f32.mrb[8].mxu0 }
  0xed   :  { %v930_v33 = vpop.f32.mrb[8].mxu1  ;;  %v1657_v34 = vadd.f32 1.0, %v2872_v29  ;;  %2881 = vpow2.f32 %v2228_v28  ;;  %v616_v35 = vadd.f32 %v4044_v49, %v615_v32  ;;  %v2498_v36 = vpop.f32.mrb[9].mxu0  ;;  %2656 = vmatmul.mubr.msk.f32.gmra.mrb[114].mxu0 %vm149_vm2, %v71_v25  ;;  %2845 = vmatmul.mubr.msk.f32.gmra.mrb[114].mxu1 %vm149_vm2, %v134_v26 }
  0xee   :  { %v931_v37 = vadd.f32 %v4044_v49, %v930_v33  ;;  %v2687_v38 = vpop.f32.mrb[9].mxu1  ;;  %2883 = vrcp.f32 %v1594_v30  ;;  %2658 = vmatprep.mubr.msk.f32.mxu0 %vm3372_vm0, %v3373_v4  ;;  %2847 = vmatprep.mubr.msk.f32.mxu1 %vm3372_vm0, %v3373_v4  ;;  %v76_v36 = vld [vmem:[%s4796_s0 + $0x1f0] sm:$0xff] }
  0xef   :  { %v2874_v41 = vpop.eup %2873  ;;  %2885 = vrcp.f32 %v1657_v34  ;;  %v2229_v42 = vmul.f32 -1.442695, %v616_v35 }
  0xf0   :  { %v2876_v43 = vpop.eup %2875  ;;  %v1595_v44 = vadd.f32 1.0, %v2874_v41  ;;  %2887 = vpow2.f32 %v2291_v31  ;;  %v2292_v45 = vmul.f32 -1.442695, %v931_v37  ;;  %v620_v46 = vpop.f32.mrb[10].mxu0 }
  0xf1   :  { %v935_v47 = vpop.f32.mrb[10].mxu1  ;;  %v1658_v48 = vadd.f32 1.0, %v2876_v43  ;;  %2889 = vpow2.f32 %v2229_v42  ;;  %v621_v50 = vadd.f32 %v4044_v49, %v620_v46  ;;  %v2501_v51 = vpop.f32.mrb[11].mxu0  ;;  %2659 = vmatmul.mubr.msk.f32.gmra.mrb[116].mxu0 %vm149_vm2, %v72_v39  ;;  %2848 = vmatmul.mubr.msk.f32.gmra.mrb[116].mxu1 %vm149_vm2, %v135_v40 }
  0xf2   :  { %v936_v52 = vadd.f32 %v4044_v49, %v935_v47  ;;  %v2690_v53 = vpop.f32.mrb[11].mxu1  ;;  %2891 = vrcp.f32 %v1595_v44  ;;  %2661 = vmatprep.mubr.msk.f32.mxu0 %vm3372_vm0, %v3373_v4  ;;  %2850 = vmatprep.mubr.msk.f32.mxu1 %vm3372_vm0, %v3373_v4 }
  0xf3   :  { %v2878_v56 = vpop.eup %2877  ;;  %2893 = vrcp.f32 %v1658_v48  ;;  %v2230_v57 = vmul.f32 -1.442695, %v621_v50 }
  0xf4   :  { %v2880_v58 = vpop.eup %2879  ;;  %v1596_v59 = vadd.f32 1.0, %v2878_v56  ;;  %2895 = vpow2.f32 %v2292_v45  ;;  %v2293_v60 = vmul.f32 -1.442695, %v936_v52  ;;  %v625_v61 = vpop.f32.mrb[12].mxu0 }
  0xf5   :  { %v940_v62 = vpop.f32.mrb[12].mxu1  ;;  %v1659_v63 = vadd.f32 1.0, %v2880_v58  ;;  %2897 = vpow2.f32 %v2230_v57  ;;  %v626_v0 = vadd.f32 %v4044_v49, %v625_v61  ;;  %v2504_v1 = vpop.f32.mrb[13].mxu0  ;;  %2662 = vmatmul.mubr.msk.f32.gmra.mrb[118].mxu0 %vm149_vm2, %v73_v54  ;;  %2851 = vmatmul.mubr.msk.f32.gmra.mrb[118].mxu1 %vm149_vm2, %v136_v55 }
  0xf6   :  { %v941_v2 = vadd.f32 %v4044_v49, %v940_v62  ;;  %v2693_v3 = vpop.f32.mrb[13].mxu1  ;;  %2899 = vrcp.f32 %v1596_v59  ;;  %2664 = vmatprep.mubr.msk.f32.mxu0 %vm3372_vm0, %v3373_v4  ;;  %2853 = vmatprep.mubr.msk.f32.mxu1 %vm3372_vm0, %v3373_v4 }
  0xf7   :  { %v2882_v7 = vpop.eup %2881  ;;  %2901 = vrcp.f32 %v1659_v63  ;;  %v2231_v8 = vmul.f32 -1.442695, %v626_v0 }
  0xf8   :  { %v2294_v9 = vmul.f32 -1.442695, %v941_v2  ;;  %v2884_v10 = vpop.eup %2883  ;;  %v1597_v11 = vadd.f32 1.0, %v2882_v7  ;;  %2903 = vpow2.f32 %v2293_v60  ;;  %v630_v12 = vpop.f32.mrb[14].mxu0 }
  0xf9   :  { %v945_v13 = vpop.f32.mrb[14].mxu1  ;;  %v2886_v14 = vpop.eup %2885  ;;  %1969 = vst.msk [vmem:[%s4798_s3] sm:$0xff] %vm149_vm2, %v2884_v10  ;;  %2905 = vpow2.f32 %v2231_v8  ;;  %v631_v15 = vadd.f32 %v4044_v49, %v630_v12  ;;  %2665 = vmatmul.mubr.msk.f32.gmra.mrb[120].mxu0 %vm149_vm2, %v74_v5  ;;  %2854 = vmatmul.mubr.msk.f32.gmra.mrb[120].mxu1 %vm149_vm2, %v137_v6 }
  0xfa   :  { %v2507_v16 = vpop.f32.mrb[15].mxu0  ;;  %v946_v17 = vadd.f32 %v4044_v49, %v945_v13  ;;  %v2696_v18 = vpop.f32.mrb[15].mxu1  ;;  %2032 = vst.msk [vmem:[%s4798_s3 + $0x1f8] sm:$0xff] %vm149_vm2, %v2886_v14  ;;  %2907 = vrcp.f32 %v1597_v11  ;;  %2667 = vmatprep.mubr.msk.f32.mxu0 %vm3372_vm0, %v3373_v4  ;;  %2856 = vmatprep.mubr.msk.f32.mxu1 %vm3372_vm0, %v3373_v4 }
  0xfb   :  { %v2888_v19 = vpop.eup %2887  ;;  %2909 = vpow2.f32 %v2294_v9  ;;  %v2232_v24 = vmul.f32 -1.442695, %v631_v15 }
  0xfc   :  { %v2890_v22 = vpop.eup %2889  ;;  %v1660_v23 = vadd.f32 1.0, %v2888_v19  ;;  %v2295_v27 = vmul.f32 -1.442695, %v946_v17  ;;  %v635_v28 = vpop.f32.mrb[16].mxu0 }
  0xfd   :  { %v2892_v25 = vpop.eup %2891  ;;  %v1598_v26 = vadd.f32 1.0, %v2890_v22  ;;  %v950_v29 = vpop.f32.mrb[16].mxu1  ;;  %v636_v31 = vadd.f32 %v4044_v49, %v635_v28  ;;  %2668 = vmatmul.mubr.msk.f32.gmra.mrb[122].mxu0 %vm149_vm2, %v75_v20  ;;  %2857 = vmatmul.mubr.msk.f32.gmra.mrb[122].mxu1 %vm149_vm2, %v138_v21 }
  0xfe   :  { %v2894_v30 = vpop.eup %2893  ;;  %1970 = vst.msk [vmem:[%s4798_s3 + $0x8] sm:$0xff] %vm149_vm2, %v2892_v25  ;;  %2911 = vrcp.f32 %v1660_v23  ;;  %v2510_v32 = vpop.f32.mrb[17].mxu0  ;;  %v951_v33 = vadd.f32 %v4044_v49, %v950_v29  ;;  %2670 = vmatprep.mubr.msk.f32.mxu0 %vm3372_vm0, %v3373_v4 }
  0xff   :  { %v2699_v34 = vpop.f32.mrb[17].mxu1  ;;  %v2896_v35 = vpop.eup %2895  ;;  %2033 = vst.msk [vmem:[%s4798_s3 + $0x200] sm:$0xff] %vm149_vm2, %v2894_v30  ;;  %2913 = vrcp.f32 %v1598_v26  ;;  %v2233_v39 = vmul.f32 -1.442695, %v636_v31 }
 0x100   :  { %v2898_v37 = vpop.eup %2897  ;;  %v1661_v38 = vadd.f32 1.0, %v2896_v35  ;;  %2915 = vpow2.f32 %v2232_v24  ;;  %v2296_v42 = vmul.f32 -1.442695, %v951_v33  ;;  %v640_v43 = vpop.f32.mrb[18].mxu0 }
 0x101   :  { %v2900_v40 = vpop.eup %2899  ;;  %v1599_v41 = vadd.f32 1.0, %v2898_v37  ;;  %2917 = vpow2.f32 %v2295_v27  ;;  %v955_v44 = vpop.f32.mrb[18].mxu1  ;;  %v641_v4 = vadd.f32 %v4044_v49, %v640_v43  ;;  %2671 = vmatmul.mubr.msk.f32.gmra.mrb[124].mxu0 %vm149_vm2, %v76_v36 }
 0x102   :  { %v2902_v45 = vpop.eup %2901  ;;  %1971 = vst.msk [vmem:[%s4798_s3 + $0x10] sm:$0xff] %vm149_vm2, %v2900_v40  ;;  %2919 = vrcp.f32 %v1661_v38  ;;  %v2513_v46 = vpop.f32.mrb[19].mxu0  ;;  %v956_v47 = vadd.f32 %v4044_v49, %v955_v44 }
 0x103   :  { %v2702_v48 = vpop.f32.mrb[19].mxu1  ;;  %v2904_v50 = vpop.eup %2903  ;;  %2034 = vst.msk [vmem:[%s4798_s3 + $0x208] sm:$0xff] %vm149_vm2, %v2902_v45  ;;  %2921 = vrcp.f32 %v1599_v41  ;;  %v2234_v53 = vmul.f32 -1.442695, %v641_v4 }
 0x104   :  { %v2906_v51 = vpop.eup %2905  ;;  %v1662_v52 = vadd.f32 1.0, %v2904_v50  ;;  %2923 = vpow2.f32 %v2233_v39  ;;  %v645_v56 = vpop.f32.mrb[20].mxu0  ;;  %v2297_v59 = vmul.f32 -1.442695, %v956_v47 }
 0x105   :  { %v2908_v54 = vpop.eup %2907  ;;  %v1600_v55 = vadd.f32 1.0, %v2906_v51  ;;  %2925 = vpow2.f32 %v2296_v42  ;;  %v960_v57 = vpop.f32.mrb[20].mxu1  ;;  %v646_v60 = vadd.f32 %v4044_v49, %v645_v56 }
 0x106   :  { %v2910_v58 = vpop.eup %2909  ;;  %1972 = vst.msk [vmem:[%s4798_s3 + $0x18] sm:$0xff] %vm149_vm2, %v2908_v54  ;;  %2927 = vrcp.f32 %v1662_v52  ;;  %v2516_v61 = vpop.f32.mrb[21].mxu0  ;;  %v961_v62 = vadd.f32 %v4044_v49, %v960_v57 }
 0x107   :  { %v2705_v63 = vpop.f32.mrb[21].mxu1  ;;  %2929 = vrcp.f32 %v1600_v55  ;;  %v1663_v0 = vadd.f32 1.0, %v2910_v58  ;;  %v2235_v2 = vmul.f32 -1.442695, %v646_v60 }
 0x108   :  { %v2912_v1 = vpop.eup %2911  ;;  %2931 = vpow2.f32 %v2234_v53  ;;  %v2298_v3 = vmul.f32 -1.442695, %v961_v62  ;;  %v650_v6 = vpop.f32.mrb[22].mxu0 }
 0x109   :  { %v2914_v5 = vpop.eup %2913  ;;  %2035 = vst.msk [vmem:[%s4798_s3 + $0x210] sm:$0xff] %vm149_vm2, %v2912_v1  ;;  %2933 = vrcp.f32 %v1663_v0  ;;  %v965_v7 = vpop.f32.mrb[22].mxu1  ;;  %v651_v9 = vadd.f32 %v4044_v49, %v650_v6 }
 0x10a   :  { %v2916_v8 = vpop.eup %2915  ;;  %1973 = vst.msk [vmem:[%s4798_s3 + $0x20] sm:$0xff] %vm149_vm2, %v2914_v5  ;;  %2935 = vpow2.f32 %v2297_v59  ;;  %v2519_v10 = vpop.f32.mrb[23].mxu0  ;;  %v966_v11 = vadd.f32 %v4044_v49, %v965_v7 }
 0x10b   :  { %v2708_v12 = vpop.f32.mrb[23].mxu1  ;;  %v2918_v13 = vpop.eup %2917  ;;  %v1601_v14 = vadd.f32 1.0, %v2916_v8  ;;  %2937 = vpow2.f32 %v2235_v2  ;;  %v2236_v17 = vmul.f32 -1.442695, %v651_v9 }
 0x10c   :  { %v2920_v15 = vpop.eup %2919  ;;  %v1664_v16 = vadd.f32 1.0, %v2918_v13  ;;  %2939 = vpow2.f32 %v2298_v3  ;;  %v2299_v18 = vmul.f32 -1.442695, %v966_v11  ;;  %v655_v20 = vpop.f32.mrb[24].mxu0 }
 0x10d   :  { %v2922_v19 = vpop.eup %2921  ;;  %2036 = vst.msk [vmem:[%s4798_s3 + $0x218] sm:$0xff] %vm149_vm2, %v2920_v15  ;;  %2941 = vrcp.f32 %v1601_v14  ;;  %v970_v21 = vpop.f32.mrb[24].mxu1  ;;  %v656_v23 = vadd.f32 %v4044_v49, %v655_v20 }
 0x10e   :  { %v2924_v22 = vpop.eup %2923  ;;  %1974 = vst.msk [vmem:[%s4798_s3 + $0x28] sm:$0xff] %vm149_vm2, %v2922_v19  ;;  %2943 = vrcp.f32 %v1664_v16  ;;  %v2522_v24 = vpop.f32.mrb[25].mxu0  ;;  %v971_v25 = vadd.f32 %v4044_v49, %v970_v21 }
 0x10f   :  { %v2711_v26 = vpop.f32.mrb[25].mxu1  ;;  %v2926_v27 = vpop.eup %2925  ;;  %v1602_v28 = vadd.f32 1.0, %v2924_v22  ;;  %2945 = vpow2.f32 %v2236_v17  ;;  %v2237_v31 = vmul.f32 -1.442695, %v656_v23 }
 0x110   :  { %v2928_v29 = vpop.eup %2927  ;;  %v1665_v30 = vadd.f32 1.0, %v2926_v27  ;;  %2947 = vpow2.f32 %v2299_v18  ;;  %v2300_v32 = vmul.f32 -1.442695, %v971_v25  ;;  %v660_v34 = vpop.f32.mrb[26].mxu0 }
 0x111   :  { %v2930_v33 = vpop.eup %2929  ;;  %2037 = vst.msk [vmem:[%s4798_s3 + $0x220] sm:$0xff] %vm149_vm2, %v2928_v29  ;;  %2949 = vrcp.f32 %v1602_v28  ;;  %v975_v35 = vpop.f32.mrb[26].mxu1  ;;  %v661_v37 = vadd.f32 %v4044_v49, %v660_v34 }
 0x112   :  { %v2932_v36 = vpop.eup %2931  ;;  %1975 = vst.msk [vmem:[%s4798_s3 + $0x30] sm:$0xff] %vm149_vm2, %v2930_v33  ;;  %2951 = vrcp.f32 %v1665_v30  ;;  %v2525_v38 = vpop.f32.mrb[27].mxu0  ;;  %v976_v39 = vadd.f32 %v4044_v49, %v975_v35 }
 0x113   :  { %v2714_v40 = vpop.f32.mrb[27].mxu1  ;;  %v2934_v41 = vpop.eup %2933  ;;  %v1603_v42 = vadd.f32 1.0, %v2932_v36  ;;  %2953 = vpow2.f32 %v2237_v31  ;;  %v2238_v44 = vmul.f32 -1.442695, %v661_v37 }
 0x114   :  { %v2936_v43 = vpop.eup %2935  ;;  %2038 = vst.msk [vmem:[%s4798_s3 + $0x228] sm:$0xff] %vm149_vm2, %v2934_v41  ;;  %2955 = vpow2.f32 %v2300_v32  ;;  %v2301_v46 = vmul.f32 -1.442695, %v976_v39  ;;  %v665_v47 = vpop.f32.mrb[28].mxu0 }
 0x115   :  { %v2938_v45 = vpop.eup %2937  ;;  %2957 = vrcp.f32 %v1603_v42  ;;  %v1666_v4 = vadd.f32 1.0, %v2936_v43  ;;  %v980_v48 = vpop.f32.mrb[28].mxu1  ;;  %v666_v52 = vadd.f32 %v4044_v49, %v665_v47 }
 0x116   :  { %v2940_v50 = vpop.eup %2939  ;;  %v1604_v51 = vadd.f32 1.0, %v2938_v45  ;;  %2959 = vpow2.f32 %v2238_v44  ;;  %v2528_v53 = vpop.f32.mrb[29].mxu0  ;;  %v981_v54 = vadd.f32 %v4044_v49, %v980_v48 }
 0x117   :  { %v2717_v55 = vpop.f32.mrb[29].mxu1  ;;  %v2942_v56 = vpop.eup %2941  ;;  %2961 = vrcp.f32 %v1666_v4  ;;  %v1667_v57 = vadd.f32 1.0, %v2940_v50  ;;  %v2239_v59 = vmul.f32 -1.442695, %v666_v52 }
 0x118   :  { %v2944_v58 = vpop.eup %2943  ;;  %1976 = vst.msk [vmem:[%s4798_s3 + $0x38] sm:$0xff] %vm149_vm2, %v2942_v56  ;;  %2963 = vrcp.f32 %v1604_v51  ;;  %v2302_v61 = vmul.f32 -1.442695, %v981_v54  ;;  %v670_v62 = vpop.f32.mrb[30].mxu0 }
 0x119   :  { %v2946_v60 = vpop.eup %2945  ;;  %2039 = vst.msk [vmem:[%s4798_s3 + $0x230] sm:$0xff] %vm149_vm2, %v2944_v58  ;;  %2965 = vrcp.f32 %v1667_v57  ;;  %v985_v63 = vpop.f32.mrb[30].mxu1  ;;  %v671_v2 = vadd.f32 %v4044_v49, %v670_v62 }
 0x11a   :  { %v2948_v0 = vpop.eup %2947  ;;  %v1605_v1 = vadd.f32 1.0, %v2946_v60  ;;  %2967 = vpow2.f32 %v2301_v46  ;;  %v2531_v3 = vpop.f32.mrb[31].mxu0  ;;  %v986_v5 = vadd.f32 %v4044_v49, %v985_v63 }
 0x11b   :  { %v2720_v6 = vpop.f32.mrb[31].mxu1  ;;  %v2950_v7 = vpop.eup %2949  ;;  %v1668_v8 = vadd.f32 1.0, %v2948_v0  ;;  %2969 = vpow2.f32 %v2239_v59  ;;  %v2240_v10 = vmul.f32 -1.442695, %v671_v2 }
 0x11c   :  { %v2952_v9 = vpop.eup %2951  ;;  %1977 = vst.msk [vmem:[%s4798_s3 + $0x40] sm:$0xff] %vm149_vm2, %v2950_v7  ;;  %2971 = vrcp.f32 %v1605_v1  ;;  %v2303_v12 = vmul.f32 -1.442695, %v986_v5  ;;  %v675_v13 = vpop.f32.mrb[32].mxu0 }
 0x11d   :  { %v2954_v11 = vpop.eup %2953  ;;  %2040 = vst.msk [vmem:[%s4798_s3 + $0x238] sm:$0xff] %vm149_vm2, %v2952_v9  ;;  %2973 = vrcp.f32 %v1668_v8  ;;  %v990_v14 = vpop.f32.mrb[32].mxu1  ;;  %v676_v17 = vadd.f32 %v4044_v49, %v675_v13 }
 0x11e   :  { %v2956_v15 = vpop.eup %2955  ;;  %v1606_v16 = vadd.f32 1.0, %v2954_v11  ;;  %2975 = vpow2.f32 %v2302_v61  ;;  %v2534_v18 = vpop.f32.mrb[33].mxu0  ;;  %v991_v19 = vadd.f32 %v4044_v49, %v990_v14 }
 0x11f   :  { %v2723_v20 = vpop.f32.mrb[33].mxu1  ;;  %v2958_v21 = vpop.eup %2957  ;;  %v1669_v22 = vadd.f32 1.0, %v2956_v15  ;;  %2977 = vpow2.f32 %v2240_v10  ;;  %v2241_v24 = vmul.f32 -1.442695, %v676_v17 }
 0x120   :  { %v2960_v23 = vpop.eup %2959  ;;  %1978 = vst.msk [vmem:[%s4798_s3 + $0x48] sm:$0xff] %vm149_vm2, %v2958_v21  ;;  %2979 = vrcp.f32 %v1606_v16  ;;  %v2304_v27 = vmul.f32 -1.442695, %v991_v19  ;;  %v680_v28 = vpop.f32.mrb[34].mxu0 }
 0x121   :  { %v2962_v25 = vpop.eup %2961  ;;  %2981 = vrcp.f32 %v1669_v22  ;;  %v1607_v26 = vadd.f32 1.0, %v2960_v23  ;;  %v995_v29 = vpop.f32.mrb[34].mxu1  ;;  %v681_v31 = vadd.f32 %v4044_v49, %v680_v28 }
 0x122   :  { %v2964_v30 = vpop.eup %2963  ;;  %2041 = vst.msk [vmem:[%s4798_s3 + $0x240] sm:$0xff] %vm149_vm2, %v2962_v25  ;;  %2983 = vpow2.f32 %v2303_v12  ;;  %v2537_v32 = vpop.f32.mrb[35].mxu0  ;;  %v996_v33 = vadd.f32 %v4044_v49, %v995_v29 }
 0x123   :  { %v2726_v34 = vpop.f32.mrb[35].mxu1  ;;  %v2966_v35 = vpop.eup %2965  ;;  %1979 = vst.msk [vmem:[%s4798_s3 + $0x50] sm:$0xff] %vm149_vm2, %v2964_v30  ;;  %2985 = vrcp.f32 %v1607_v26  ;;  %v2242_v37 = vmul.f32 -1.442695, %v681_v31 }
 0x124   :  { %v2968_v36 = vpop.eup %2967  ;;  %2042 = vst.msk [vmem:[%s4798_s3 + $0x248] sm:$0xff] %vm149_vm2, %v2966_v35  ;;  %2987 = vpow2.f32 %v2241_v24  ;;  %v2305_v40 = vmul.f32 -1.442695, %v996_v33  ;;  %v685_v41 = vpop.f32.mrb[36].mxu0 }
 0x125   :  { %v2970_v38 = vpop.eup %2969  ;;  %v1670_v39 = vadd.f32 1.0, %v2968_v36  ;;  %2989 = vpow2.f32 %v2304_v27  ;;  %v1000_v42 = vpop.f32.mrb[36].mxu1  ;;  %v686_v45 = vadd.f32 %v4044_v49, %v685_v41 }
 0x126   :  { %v2972_v43 = vpop.eup %2971  ;;  %v1608_v44 = vadd.f32 1.0, %v2970_v38  ;;  %2991 = vpow2.f32 %v2242_v37  ;;  %v2540_v4 = vpop.f32.mrb[37].mxu0  ;;  %v1001_v46 = vadd.f32 %v4044_v49, %v1000_v42 }
 0x127   :  { %v2729_v47 = vpop.f32.mrb[37].mxu1  ;;  %v2974_v48 = vpop.eup %2973  ;;  %1980 = vst.msk [vmem:[%s4798_s3 + $0x58] sm:$0xff] %vm149_vm2, %v2972_v43  ;;  %2993 = vrcp.f32 %v1670_v39  ;;  %v2243_v51 = vmul.f32 -1.442695, %v686_v45 }
 0x128   :  { %v2976_v50 = vpop.eup %2975  ;;  %2043 = vst.msk [vmem:[%s4798_s3 + $0x250] sm:$0xff] %vm149_vm2, %v2974_v48  ;;  %2995 = vrcp.f32 %v1608_v44  ;;  %v2306_v54 = vmul.f32 -1.442695, %v1001_v46  ;;  %v690_v55 = vpop.f32.mrb[38].mxu0 }
 0x129   :  { %v2978_v52 = vpop.eup %2977  ;;  %v1671_v53 = vadd.f32 1.0, %v2976_v50  ;;  %2997 = vpow2.f32 %v2305_v40  ;;  %v1005_v56 = vpop.f32.mrb[38].mxu1  ;;  %v691_v59 = vadd.f32 %v4044_v49, %v690_v55 }
 0x12a   :  { %v2980_v57 = vpop.eup %2979  ;;  %v1609_v58 = vadd.f32 1.0, %v2978_v52  ;;  %2999 = vpow2.f32 %v2243_v51  ;;  %v2543_v60 = vpop.f32.mrb[39].mxu0  ;;  %v1006_v61 = vadd.f32 %v4044_v49, %v1005_v56 }
 0x12b   :  { %v2732_v62 = vpop.f32.mrb[39].mxu1  ;;  %v2982_v63 = vpop.eup %2981  ;;  %1981 = vst.msk [vmem:[%s4798_s3 + $0x60] sm:$0xff] %vm149_vm2, %v2980_v57  ;;  %3001 = vrcp.f32 %v1671_v53  ;;  %v2244_v1 = vmul.f32 -1.442695, %v691_v59 }
 0x12c   :  { %v2984_v0 = vpop.eup %2983  ;;  %2044 = vst.msk [vmem:[%s4798_s3 + $0x258] sm:$0xff] %vm149_vm2, %v2982_v63  ;;  %3003 = vrcp.f32 %v1609_v58  ;;  %v2307_v2 = vmul.f32 -1.442695, %v1006_v61  ;;  %v695_v6 = vpop.f32.mrb[40].mxu0 }
 0x12d   :  { %v2986_v3 = vpop.eup %2985  ;;  %v1672_v5 = vadd.f32 1.0, %v2984_v0  ;;  %3005 = vpow2.f32 %v2306_v54  ;;  %v1010_v7 = vpop.f32.mrb[40].mxu1  ;;  %v696_v9 = vadd.f32 %v4044_v49, %v695_v6 }
 0x12e   :  { %v2988_v8 = vpop.eup %2987  ;;  %1982 = vst.msk [vmem:[%s4798_s3 + $0x68] sm:$0xff] %vm149_vm2, %v2986_v3  ;;  %3007 = vpow2.f32 %v2244_v1  ;;  %v2546_v10 = vpop.f32.mrb[41].mxu0  ;;  %v1011_v11 = vadd.f32 %v4044_v49, %v1010_v7 }
 0x12f   :  { %v2735_v12 = vpop.f32.mrb[41].mxu1  ;;  %v2990_v13 = vpop.eup %2989  ;;  %3009 = vrcp.f32 %v1672_v5  ;;  %v1610_v14 = vadd.f32 1.0, %v2988_v8  ;;  %v2245_v17 = vmul.f32 -1.442695, %v696_v9 }
 0x130   :  { %v2992_v15 = vpop.eup %2991  ;;  %v1673_v16 = vadd.f32 1.0, %v2990_v13  ;;  %3011 = vpow2.f32 %v2307_v2  ;;  %v2308_v20 = vmul.f32 -1.442695, %v1011_v11  ;;  %v700_v21 = vpop.f32.mrb[42].mxu0 }
 0x131   :  { %v2994_v18 = vpop.eup %2993  ;;  %3013 = vrcp.f32 %v1610_v14  ;;  %v1611_v19 = vadd.f32 1.0, %v2992_v15  ;;  %v1015_v22 = vpop.f32.mrb[42].mxu1  ;;  %v701_v24 = vadd.f32 %v4044_v49, %v700_v21 }
 0x132   :  { %v2996_v23 = vpop.eup %2995  ;;  %2045 = vst.msk [vmem:[%s4798_s3 + $0x260] sm:$0xff] %vm149_vm2, %v2994_v18  ;;  %3015 = vrcp.f32 %v1673_v16  ;;  %v2549_v25 = vpop.f32.mrb[43].mxu0  ;;  %v1016_v26 = vadd.f32 %v4044_v49, %v1015_v22  ;;  %v4362_v18 = vld [vmem:[%s4797_s2] ss:$0 sm:$0xff] }
 0x133   :  { %v2738_v27 = vpop.f32.mrb[43].mxu1  ;;  %v2998_v28 = vpop.eup %2997  ;;  %1983 = vst.msk [vmem:[%s4798_s3 + $0x70] sm:$0xff] %vm149_vm2, %v2996_v23  ;;  %3017 = vrcp.f32 %v1611_v19  ;;  %v2246_v31 = vmul.f32 -1.442695, %v701_v24 }
 0x134   :  { %v3000_v29 = vpop.eup %2999  ;;  %v1674_v30 = vadd.f32 1.0, %v2998_v28  ;;  %3019 = vpow2.f32 %v2245_v17  ;;  %v2309_v34 = vmul.f32 -1.442695, %v1016_v26  ;;  %v705_v35 = vpop.f32.mrb[44].mxu0 }
 0x135   :  { %v3002_v32 = vpop.eup %3001  ;;  %v1612_v33 = vadd.f32 1.0, %v3000_v29  ;;  %3021 = vpow2.f32 %v2308_v20  ;;  %v1020_v36 = vpop.f32.mrb[44].mxu1  ;;  %v706_v38 = vadd.f32 %v4044_v49, %v705_v35 }
 0x136   :  { %v3004_v37 = vpop.eup %3003  ;;  %2046 = vst.msk [vmem:[%s4798_s3 + $0x268] sm:$0xff] %vm149_vm2, %v3002_v32  ;;  %3023 = vrcp.f32 %v1674_v30  ;;  %v2552_v39 = vpop.f32.mrb[45].mxu0  ;;  %v1021_v40 = vadd.f32 %v4044_v49, %v1020_v36 }
 0x137   :  { %v2741_v41 = vpop.f32.mrb[45].mxu1  ;;  %v3006_v42 = vpop.eup %3005  ;;  %1984 = vst.msk [vmem:[%s4798_s3 + $0x78] sm:$0xff] %vm149_vm2, %v3004_v37  ;;  %3025 = vrcp.f32 %v1612_v33  ;;  %v2247_v45 = vmul.f32 -1.442695, %v706_v38 }
 0x138   :  { %v3008_v43 = vpop.eup %3007  ;;  %v1675_v44 = vadd.f32 1.0, %v3006_v42  ;;  %3027 = vpow2.f32 %v2246_v31  ;;  %v710_v47 = vpop.f32.mrb[46].mxu0  ;;  %v2310_v51 = vmul.f32 -1.442695, %v1021_v40 }
 0x139   :  { %v3010_v4 = vpop.eup %3009  ;;  %v1613_v46 = vadd.f32 1.0, %v3008_v43  ;;  %3029 = vpow2.f32 %v2309_v34  ;;  %v1025_v48 = vpop.f32.mrb[46].mxu1  ;;  %v711_v52 = vadd.f32 %v4044_v49, %v710_v47 }
 0x13a   :  { %v3012_v50 = vpop.eup %3011  ;;  %2047 = vst.msk [vmem:[%s4798_s3 + $0x270] sm:$0xff] %vm149_vm2, %v3010_v4  ;;  %3031 = vrcp.f32 %v1675_v44  ;;  %v2555_v53 = vpop.f32.mrb[47].mxu0  ;;  %v1026_v54 = vadd.f32 %v4044_v49, %v1025_v48 }
 0x13b   :  { %v2744_v55 = vpop.f32.mrb[47].mxu1  ;;  %v3014_v56 = vpop.eup %3013  ;;  %3033 = vrcp.f32 %v1613_v46  ;;  %v1676_v57 = vadd.f32 1.0, %v3012_v50  ;;  %v2248_v59 = vmul.f32 -1.442695, %v711_v52 }
 0x13c   :  { %v3016_v58 = vpop.eup %3015  ;;  %1985 = vst.msk [vmem:[%s4798_s3 + $0x80] sm:$0xff] %vm149_vm2, %v3014_v56  ;;  %3035 = vpow2.f32 %v2247_v45  ;;  %v2311_v60 = vmul.f32 -1.442695, %v1026_v54  ;;  %v715_v62 = vpop.f32.mrb[48].mxu0 }
 0x13d   :  { %v3018_v61 = vpop.eup %3017  ;;  %2048 = vst.msk [vmem:[%s4798_s3 + $0x278] sm:$0xff] %vm149_vm2, %v3016_v58  ;;  %3037 = vrcp.f32 %v1676_v57  ;;  %v1030_v63 = vpop.f32.mrb[48].mxu1  ;;  %v716_v1 = vadd.f32 %v4044_v49, %v715_v62 }
 0x13e   :  { %v3020_v0 = vpop.eup %3019  ;;  %1986 = vst.msk [vmem:[%s4798_s3 + $0x88] sm:$0xff] %vm149_vm2, %v3018_v61  ;;  %3039 = vpow2.f32 %v2310_v51  ;;  %v2558_v2 = vpop.f32.mrb[49].mxu0  ;;  %v1031_v3 = vadd.f32 %v4044_v49, %v1030_v63 }
 0x13f   :  { %v2747_v5 = vpop.f32.mrb[49].mxu1  ;;  %v3022_v6 = vpop.eup %3021  ;;  %v1614_v7 = vadd.f32 1.0, %v3020_v0  ;;  %3041 = vpow2.f32 %v2248_v59  ;;  %v2249_v10 = vmul.f32 -1.442695, %v716_v1 }
 0x140   :  { %v3024_v8 = vpop.eup %3023  ;;  %v1677_v9 = vadd.f32 1.0, %v3022_v6  ;;  %3043 = vpow2.f32 %v2311_v60  ;;  %v2312_v11 = vmul.f32 -1.442695, %v1031_v3  ;;  %v720_v13 = vpop.f32.mrb[50].mxu0 }
 0x141   :  { %v3026_v12 = vpop.eup %3025  ;;  %2049 = vst.msk [vmem:[%s4798_s3 + $0x280] sm:$0xff] %vm149_vm2, %v3024_v8  ;;  %3045 = vrcp.f32 %v1614_v7  ;;  %v1035_v14 = vpop.f32.mrb[50].mxu1  ;;  %v721_v16 = vadd.f32 %v4044_v49, %v720_v13 }
 0x142   :  { %v3028_v15 = vpop.eup %3027  ;;  %1987 = vst.msk [vmem:[%s4798_s3 + $0x90] sm:$0xff] %vm149_vm2, %v3026_v12  ;;  %3047 = vrcp.f32 %v1677_v9  ;;  %v2561_v17 = vpop.f32.mrb[51].mxu0  ;;  %v1036_v19 = vadd.f32 %v4362_v18, %v1035_v14 }
 0x143   :  { %v2750_v20 = vpop.f32.mrb[51].mxu1  ;;  %v3030_v21 = vpop.eup %3029  ;;  %v1615_v22 = vadd.f32 1.0, %v3028_v15  ;;  %3049 = vpow2.f32 %v2249_v10  ;;  %v2250_v25 = vmul.f32 -1.442695, %v721_v16 }
 0x144   :  { %v3032_v23 = vpop.eup %3031  ;;  %v1678_v24 = vadd.f32 1.0, %v3030_v21  ;;  %3051 = vpow2.f32 %v2312_v11  ;;  %v2313_v26 = vmul.f32 -1.442695, %v1036_v19  ;;  %v725_v49 = vpop.f32.mrb[52].mxu0 }
 0x145   :  { %v3034_v27 = vpop.eup %3033  ;;  %2050 = vst.msk [vmem:[%s4798_s3 + $0x288] sm:$0xff] %vm149_vm2, %v3032_v23  ;;  %3053 = vrcp.f32 %v1615_v22  ;;  %v1040_v28 = vpop.f32.mrb[52].mxu1  ;;  %v726_v30 = vadd.f32 %v4362_v18, %v725_v49 }
 0x146   :  { %v3036_v29 = vpop.eup %3035  ;;  %1988 = vst.msk [vmem:[%s4798_s3 + $0x98] sm:$0xff] %vm149_vm2, %v3034_v27  ;;  %3055 = vrcp.f32 %v1678_v24  ;;  %v2564_v31 = vpop.f32.mrb[53].mxu0  ;;  %v1041_v32 = vadd.f32 %v4362_v18, %v1040_v28 }
 0x147   :  { %v2753_v33 = vpop.f32.mrb[53].mxu1  ;;  %v3038_v34 = vpop.eup %3037  ;;  %v1616_v35 = vadd.f32 1.0, %v3036_v29  ;;  %3057 = vpow2.f32 %v2250_v25  ;;  %v2251_v37 = vmul.f32 -1.442695, %v726_v30 }
 0x148   :  { %v3040_v36 = vpop.eup %3039  ;;  %2051 = vst.msk [vmem:[%s4798_s3 + $0x290] sm:$0xff] %vm149_vm2, %v3038_v34  ;;  %3059 = vpow2.f32 %v2313_v26  ;;  %v2314_v40 = vmul.f32 -1.442695, %v1041_v32  ;;  %v730_v41 = vpop.f32.mrb[54].mxu0 }
 0x149   :  { %v3042_v38 = vpop.eup %3041  ;;  %3061 = vrcp.f32 %v1616_v35  ;;  %v1679_v39 = vadd.f32 1.0, %v3040_v36  ;;  %v1045_v42 = vpop.f32.mrb[54].mxu1  ;;  %v731_v45 = vadd.f32 %v4362_v18, %v730_v41 }
 0x14a   :  { %v3044_v43 = vpop.eup %3043  ;;  %v1617_v44 = vadd.f32 1.0, %v3042_v38  ;;  %3063 = vpow2.f32 %v2251_v37  ;;  %v2567_v4 = vpop.f32.mrb[55].mxu0  ;;  %v1046_v46 = vadd.f32 %v4362_v18, %v1045_v42 }
 0x14b   :  { %v2756_v47 = vpop.f32.mrb[55].mxu1  ;;  %v3046_v48 = vpop.eup %3045  ;;  %3065 = vrcp.f32 %v1679_v39  ;;  %v1680_v50 = vadd.f32 1.0, %v3044_v43  ;;  %v2252_v52 = vmul.f32 -1.442695, %v731_v45 }
 0x14c   :  { %v3048_v51 = vpop.eup %3047  ;;  %1989 = vst.msk [vmem:[%s4798_s3 + $0xa0] sm:$0xff] %vm149_vm2, %v3046_v48  ;;  %3067 = vrcp.f32 %v1617_v44  ;;  %v2315_v54 = vmul.f32 -1.442695, %v1046_v46  ;;  %v735_v55 = vpop.f32.mrb[56].mxu0 }
 0x14d   :  { %v3050_v53 = vpop.eup %3049  ;;  %2052 = vst.msk [vmem:[%s4798_s3 + $0x298] sm:$0xff] %vm149_vm2, %v3048_v51  ;;  %3069 = vrcp.f32 %v1680_v50  ;;  %v1050_v56 = vpop.f32.mrb[56].mxu1  ;;  %v736_v59 = vadd.f32 %v4362_v18, %v735_v55 }
 0x14e   :  { %v3052_v57 = vpop.eup %3051  ;;  %v1618_v58 = vadd.f32 1.0, %v3050_v53  ;;  %3071 = vpow2.f32 %v2314_v40  ;;  %v2570_v60 = vpop.f32.mrb[57].mxu0  ;;  %v1051_v61 = vadd.f32 %v4362_v18, %v1050_v56 }
 0x14f   :  { %v2759_v62 = vpop.f32.mrb[57].mxu1  ;;  %v3054_v63 = vpop.eup %3053  ;;  %v1681_v0 = vadd.f32 1.0, %v3052_v57  ;;  %3073 = vpow2.f32 %v2252_v52  ;;  %v2253_v2 = vmul.f32 -1.442695, %v736_v59 }
 0x150   :  { %v3056_v1 = vpop.eup %3055  ;;  %1990 = vst.msk [vmem:[%s4798_s3 + $0xa8] sm:$0xff] %vm149_vm2, %v3054_v63  ;;  %3075 = vrcp.f32 %v1618_v58  ;;  %v2316_v5 = vmul.f32 -1.442695, %v1051_v61  ;;  %v740_v6 = vpop.f32.mrb[58].mxu0 }
 0x151   :  { %v3058_v3 = vpop.eup %3057  ;;  %2053 = vst.msk [vmem:[%s4798_s3 + $0x2a0] sm:$0xff] %vm149_vm2, %v3056_v1  ;;  %3077 = vrcp.f32 %v1681_v0  ;;  %v1055_v7 = vpop.f32.mrb[58].mxu1  ;;  %v741_v10 = vadd.f32 %v4362_v18, %v740_v6 }
 0x152   :  { %v3060_v8 = vpop.eup %3059  ;;  %v1619_v9 = vadd.f32 1.0, %v3058_v3  ;;  %3079 = vpow2.f32 %v2315_v54  ;;  %v2573_v11 = vpop.f32.mrb[59].mxu0  ;;  %v1056_v12 = vadd.f32 %v4362_v18, %v1055_v7 }
 0x153   :  { %v2762_v13 = vpop.f32.mrb[59].mxu1  ;;  %v3062_v14 = vpop.eup %3061  ;;  %v1682_v15 = vadd.f32 1.0, %v3060_v8  ;;  %3081 = vpow2.f32 %v2253_v2  ;;  %v2254_v17 = vmul.f32 -1.442695, %v741_v10 }
 0x154   :  { %v3064_v16 = vpop.eup %3063  ;;  %1991 = vst.msk [vmem:[%s4798_s3 + $0xb0] sm:$0xff] %vm149_vm2, %v3062_v14  ;;  %3083 = vrcp.f32 %v1619_v9  ;;  %v2317_v21 = vmul.f32 -1.442695, %v1056_v12  ;;  %v745_v22 = vpop.f32.mrb[60].mxu0 }
 0x155   :  { %v3066_v19 = vpop.eup %3065  ;;  %3085 = vrcp.f32 %v1682_v15  ;;  %v1620_v20 = vadd.f32 1.0, %v3064_v16  ;;  %v1060_v23 = vpop.f32.mrb[60].mxu1  ;;  %v746_v25 = vadd.f32 %v4362_v18, %v745_v22 }
 0x156   :  { %v3068_v24 = vpop.eup %3067  ;;  %2054 = vst.msk [vmem:[%s4798_s3 + $0x2a8] sm:$0xff] %vm149_vm2, %v3066_v19  ;;  %3087 = vpow2.f32 %v2316_v5  ;;  %v2576_v26 = vpop.f32.mrb[61].mxu0  ;;  %v1061_v27 = vadd.f32 %v4362_v18, %v1060_v23 }
 0x157   :  { %v2765_v49 = vpop.f32.mrb[61].mxu1  ;;  %v3070_v28 = vpop.eup %3069  ;;  %1992 = vst.msk [vmem:[%s4798_s3 + $0xb8] sm:$0xff] %vm149_vm2, %v3068_v24  ;;  %3089 = vrcp.f32 %v1620_v20  ;;  %v2255_v30 = vmul.f32 -1.442695, %v746_v25 }
 0x158   :  { %v3072_v29 = vpop.eup %3071  ;;  %2055 = vst.msk [vmem:[%s4798_s3 + $0x2b0] sm:$0xff] %vm149_vm2, %v3070_v28  ;;  %3091 = vpow2.f32 %v2254_v17  ;;  %v2318_v33 = vmul.f32 -1.442695, %v1061_v27  ;;  %v750_v34 = vpop.f32.mrb[62].mxu0 }
 0x159   :  { %v3074_v31 = vpop.eup %3073  ;;  %v1683_v32 = vadd.f32 1.0, %v3072_v29  ;;  %3093 = vpow2.f32 %v2317_v21  ;;  %v1065_v35 = vpop.f32.mrb[62].mxu1  ;;  %v751_v38 = vadd.f32 %v4362_v18, %v750_v34 }
 0x15a   :  { %v3076_v36 = vpop.eup %3075  ;;  %v1621_v37 = vadd.f32 1.0, %v3074_v31  ;;  %3095 = vpow2.f32 %v2255_v30  ;;  %v2579_v39 = vpop.f32.mrb[63].mxu0  ;;  %v1066_v40 = vadd.f32 %v4362_v18, %v1065_v35 }
 0x15b   :  { %v2768_v41 = vpop.f32.mrb[63].mxu1  ;;  %v3078_v42 = vpop.eup %3077  ;;  %1993 = vst.msk [vmem:[%s4798_s3 + $0xc0] sm:$0xff] %vm149_vm2, %v3076_v36  ;;  %3097 = vrcp.f32 %v1683_v32  ;;  %v2256_v44 = vmul.f32 -1.442695, %v751_v38 }
 0x15c   :  { %v3080_v43 = vpop.eup %3079  ;;  %2056 = vst.msk [vmem:[%s4798_s3 + $0x2b8] sm:$0xff] %vm149_vm2, %v3078_v42  ;;  %3099 = vrcp.f32 %v1621_v37  ;;  %v2319_v46 = vmul.f32 -1.442695, %v1066_v40  ;;  %v755_v47 = vpop.f32.mrb[64].mxu0 }
 0x15d   :  { %v3082_v45 = vpop.eup %3081  ;;  %v1684_v4 = vadd.f32 1.0, %v3080_v43  ;;  %3101 = vpow2.f32 %v2318_v33  ;;  %v1070_v48 = vpop.f32.mrb[64].mxu1  ;;  %v756_v52 = vadd.f32 %v4362_v18, %v755_v47 }
 0x15e   :  { %v3084_v50 = vpop.eup %3083  ;;  %v1622_v51 = vadd.f32 1.0, %v3082_v45  ;;  %3103 = vpow2.f32 %v2256_v44  ;;  %v2582_v53 = vpop.f32.mrb[65].mxu0  ;;  %v1071_v54 = vadd.f32 %v4362_v18, %v1070_v48 }
 0x15f   :  { %v2771_v55 = vpop.f32.mrb[65].mxu1  ;;  %v3086_v56 = vpop.eup %3085  ;;  %1994 = vst.msk [vmem:[%s4798_s3 + $0xc8] sm:$0xff] %vm149_vm2, %v3084_v50  ;;  %3105 = vrcp.f32 %v1684_v4  ;;  %v2257_v58 = vmul.f32 -1.442695, %v756_v52 }
 0x160   :  { %v3088_v57 = vpop.eup %3087  ;;  %2057 = vst.msk [vmem:[%s4798_s3 + $0x2c0] sm:$0xff] %vm149_vm2, %v3086_v56  ;;  %3107 = vrcp.f32 %v1622_v51  ;;  %v2320_v59 = vmul.f32 -1.442695, %v1071_v54  ;;  %v760_v62 = vpop.f32.mrb[66].mxu0 }
 0x161   :  { %v3090_v60 = vpop.eup %3089  ;;  %v1685_v61 = vadd.f32 1.0, %v3088_v57  ;;  %3109 = vpow2.f32 %v2319_v46  ;;  %v1075_v63 = vpop.f32.mrb[66].mxu1  ;;  %v761_v1 = vadd.f32 %v4362_v18, %v760_v62 }
 0x162   :  { %v3092_v0 = vpop.eup %3091  ;;  %1995 = vst.msk [vmem:[%s4798_s3 + $0xd0] sm:$0xff] %vm149_vm2, %v3090_v60  ;;  %3111 = vpow2.f32 %v2257_v58  ;;  %v2585_v2 = vpop.f32.mrb[67].mxu0  ;;  %v1076_v3 = vadd.f32 %v4362_v18, %v1075_v63 }
 0x163   :  { %v2774_v5 = vpop.f32.mrb[67].mxu1  ;;  %v3094_v6 = vpop.eup %3093  ;;  %3113 = vrcp.f32 %v1685_v61  ;;  %v1623_v7 = vadd.f32 1.0, %v3092_v0  ;;  %v2258_v10 = vmul.f32 -1.442695, %v761_v1 }
 0x164   :  { %v3096_v8 = vpop.eup %3095  ;;  %v1686_v9 = vadd.f32 1.0, %v3094_v6  ;;  %3115 = vpow2.f32 %v2320_v59  ;;  %v2321_v13 = vmul.f32 -1.442695, %v1076_v3  ;;  %v765_v14 = vpop.f32.mrb[68].mxu0 }
 0x165   :  { %v3098_v11 = vpop.eup %3097  ;;  %3117 = vrcp.f32 %v1623_v7  ;;  %v1624_v12 = vadd.f32 1.0, %v3096_v8  ;;  %v1080_v15 = vpop.f32.mrb[68].mxu1  ;;  %v766_v17 = vadd.f32 %v4362_v18, %v765_v14 }
 0x166   :  { %v3100_v16 = vpop.eup %3099  ;;  %2058 = vst.msk [vmem:[%s4798_s3 + $0x2c8] sm:$0xff] %vm149_vm2, %v3098_v11  ;;  %3119 = vrcp.f32 %v1686_v9  ;;  %v2588_v19 = vpop.f32.mrb[69].mxu0  ;;  %v1081_v20 = vadd.f32 %v4362_v18, %v1080_v15 }
 0x167   :  { %v2777_v21 = vpop.f32.mrb[69].mxu1  ;;  %v3102_v22 = vpop.eup %3101  ;;  %1996 = vst.msk [vmem:[%s4798_s3 + $0xd8] sm:$0xff] %vm149_vm2, %v3100_v16  ;;  %3121 = vrcp.f32 %v1624_v12  ;;  %v2259_v25 = vmul.f32 -1.442695, %v766_v17 }
 0x168   :  { %v3104_v23 = vpop.eup %3103  ;;  %v1687_v24 = vadd.f32 1.0, %v3102_v22  ;;  %3123 = vpow2.f32 %v2258_v10  ;;  %v2322_v49 = vmul.f32 -1.442695, %v1081_v20  ;;  %v770_v28 = vpop.f32.mrb[70].mxu0 }
 0x169   :  { %v3106_v26 = vpop.eup %3105  ;;  %v1625_v27 = vadd.f32 1.0, %v3104_v23  ;;  %3125 = vpow2.f32 %v2321_v13  ;;  %v1085_v29 = vpop.f32.mrb[70].mxu1  ;;  %v771_v31 = vadd.f32 %v4362_v18, %v770_v28 }
 0x16a   :  { %v3108_v30 = vpop.eup %3107  ;;  %2059 = vst.msk [vmem:[%s4798_s3 + $0x2d0] sm:$0xff] %vm149_vm2, %v3106_v26  ;;  %3127 = vrcp.f32 %v1687_v24  ;;  %v2591_v32 = vpop.f32.mrb[71].mxu0  ;;  %v1086_v33 = vadd.f32 %v4362_v18, %v1085_v29 }
 0x16b   :  { %v2780_v34 = vpop.f32.mrb[71].mxu1  ;;  %v3110_v35 = vpop.eup %3109  ;;  %1997 = vst.msk [vmem:[%s4798_s3 + $0xe0] sm:$0xff] %vm149_vm2, %v3108_v30  ;;  %3129 = vrcp.f32 %v1625_v27  ;;  %v2260_v38 = vmul.f32 -1.442695, %v771_v31 }
 0x16c   :  { %v3112_v36 = vpop.eup %3111  ;;  %v1688_v37 = vadd.f32 1.0, %v3110_v35  ;;  %3131 = vpow2.f32 %v2259_v25  ;;  %v775_v41 = vpop.f32.mrb[72].mxu0  ;;  %v2323_v44 = vmul.f32 -1.442695, %v1086_v33 }
 0x16d   :  { %v3114_v39 = vpop.eup %3113  ;;  %v1626_v40 = vadd.f32 1.0, %v3112_v36  ;;  %3133 = vpow2.f32 %v2322_v49  ;;  %v1090_v42 = vpop.f32.mrb[72].mxu1  ;;  %v776_v45 = vadd.f32 %v4362_v18, %v775_v41 }
 0x16e   :  { %v3116_v43 = vpop.eup %3115  ;;  %2060 = vst.msk [vmem:[%s4798_s3 + $0x2d8] sm:$0xff] %vm149_vm2, %v3114_v39  ;;  %3135 = vrcp.f32 %v1688_v37  ;;  %v2594_v4 = vpop.f32.mrb[73].mxu0  ;;  %v1091_v46 = vadd.f32 %v4362_v18, %v1090_v42 }
 0x16f   :  { %v2783_v47 = vpop.f32.mrb[73].mxu1  ;;  %v3118_v48 = vpop.eup %3117  ;;  %3137 = vrcp.f32 %v1626_v40  ;;  %v1689_v50 = vadd.f32 1.0, %v3116_v43  ;;  %v2261_v52 = vmul.f32 -1.442695, %v776_v45 }
 0x170   :  { %v3120_v51 = vpop.eup %3119  ;;  %1998 = vst.msk [vmem:[%s4798_s3 + $0xe8] sm:$0xff] %vm149_vm2, %v3118_v48  ;;  %3139 = vpow2.f32 %v2260_v38  ;;  %v2324_v53 = vmul.f32 -1.442695, %v1091_v46  ;;  %v780_v55 = vpop.f32.mrb[74].mxu0 }
 0x171   :  { %v3122_v54 = vpop.eup %3121  ;;  %2061 = vst.msk [vmem:[%s4798_s3 + $0x2e0] sm:$0xff] %vm149_vm2, %v3120_v51  ;;  %3141 = vrcp.f32 %v1689_v50  ;;  %v1095_v56 = vpop.f32.mrb[74].mxu1  ;;  %v781_v58 = vadd.f32 %v4362_v18, %v780_v55 }
 0x172   :  { %v3124_v57 = vpop.eup %3123  ;;  %1999 = vst.msk [vmem:[%s4798_s3 + $0xf0] sm:$0xff] %vm149_vm2, %v3122_v54  ;;  %3143 = vpow2.f32 %v2323_v44  ;;  %v2597_v59 = vpop.f32.mrb[75].mxu0  ;;  %v1096_v60 = vadd.f32 %v4362_v18, %v1095_v56 }
 0x173   :  { %v2786_v61 = vpop.f32.mrb[75].mxu1  ;;  %v3126_v62 = vpop.eup %3125  ;;  %v1627_v63 = vadd.f32 1.0, %v3124_v57  ;;  %3145 = vpow2.f32 %v2261_v52  ;;  %v2262_v2 = vmul.f32 -1.442695, %v781_v58 }
 0x174   :  { %v3128_v0 = vpop.eup %3127  ;;  %v1690_v1 = vadd.f32 1.0, %v3126_v62  ;;  %3147 = vpow2.f32 %v2324_v53  ;;  %v2325_v3 = vmul.f32 -1.442695, %v1096_v60  ;;  %v785_v6 = vpop.f32.mrb[76].mxu0 }
 0x175   :  { %v3130_v5 = vpop.eup %3129  ;;  %2062 = vst.msk [vmem:[%s4798_s3 + $0x2e8] sm:$0xff] %vm149_vm2, %v3128_v0  ;;  %3149 = vrcp.f32 %v1627_v63  ;;  %v1100_v7 = vpop.f32.mrb[76].mxu1  ;;  %v786_v9 = vadd.f32 %v4362_v18, %v785_v6 }
 0x176   :  { %v3132_v8 = vpop.eup %3131  ;;  %2000 = vst.msk [vmem:[%s4798_s3 + $0xf8] sm:$0xff] %vm149_vm2, %v3130_v5  ;;  %3151 = vrcp.f32 %v1690_v1  ;;  %v2600_v10 = vpop.f32.mrb[77].mxu0  ;;  %v1101_v11 = vadd.f32 %v4362_v18, %v1100_v7 }
 0x177   :  { %v2789_v12 = vpop.f32.mrb[77].mxu1  ;;  %v3134_v13 = vpop.eup %3133  ;;  %v1628_v14 = vadd.f32 1.0, %v3132_v8  ;;  %3153 = vpow2.f32 %v2262_v2  ;;  %v2263_v17 = vmul.f32 -1.442695, %v786_v9 }
 0x178   :  { %v3136_v15 = vpop.eup %3135  ;;  %v1691_v16 = vadd.f32 1.0, %v3134_v13  ;;  %3155 = vpow2.f32 %v2325_v3  ;;  %v2326_v19 = vmul.f32 -1.442695, %v1101_v11  ;;  %v790_v21 = vpop.f32.mrb[78].mxu0 }
 0x179   :  { %v3138_v20 = vpop.eup %3137  ;;  %2063 = vst.msk [vmem:[%s4798_s3 + $0x2f0] sm:$0xff] %vm149_vm2, %v3136_v15  ;;  %3157 = vrcp.f32 %v1628_v14  ;;  %v1105_v22 = vpop.f32.mrb[78].mxu1  ;;  %v791_v24 = vadd.f32 %v4362_v18, %v790_v21 }
 0x17a   :  { %v3140_v23 = vpop.eup %3139  ;;  %2001 = vst.msk [vmem:[%s4798_s3 + $0x100] sm:$0xff] %vm149_vm2, %v3138_v20  ;;  %3159 = vrcp.f32 %v1691_v16  ;;  %v2603_v25 = vpop.f32.mrb[79].mxu0  ;;  %v1106_v26 = vadd.f32 %v4362_v18, %v1105_v22 }
 0x17b   :  { %v2792_v27 = vpop.f32.mrb[79].mxu1  ;;  %v3142_v49 = vpop.eup %3141  ;;  %v1629_v28 = vadd.f32 1.0, %v3140_v23  ;;  %3161 = vpow2.f32 %v2263_v17  ;;  %v2264_v30 = vmul.f32 -1.442695, %v791_v24 }
 0x17c   :  { %v3144_v29 = vpop.eup %3143  ;;  %2064 = vst.msk [vmem:[%s4798_s3 + $0x2f8] sm:$0xff] %vm149_vm2, %v3142_v49  ;;  %3163 = vpow2.f32 %v2326_v19  ;;  %v2327_v33 = vmul.f32 -1.442695, %v1106_v26  ;;  %v795_v34 = vpop.f32.mrb[80].mxu0 }
 0x17d   :  { %v3146_v31 = vpop.eup %3145  ;;  %3165 = vrcp.f32 %v1629_v28  ;;  %v1692_v32 = vadd.f32 1.0, %v3144_v29  ;;  %v1110_v35 = vpop.f32.mrb[80].mxu1  ;;  %v796_v38 = vadd.f32 %v4362_v18, %v795_v34 }
 0x17e   :  { %v3148_v36 = vpop.eup %3147  ;;  %v1630_v37 = vadd.f32 1.0, %v3146_v31  ;;  %3167 = vpow2.f32 %v2264_v30  ;;  %v2606_v39 = vpop.f32.mrb[81].mxu0  ;;  %v1111_v40 = vadd.f32 %v4362_v18, %v1110_v35 }
 0x17f   :  { %v2795_v41 = vpop.f32.mrb[81].mxu1  ;;  %v3150_v42 = vpop.eup %3149  ;;  %3169 = vrcp.f32 %v1692_v32  ;;  %v1693_v43 = vadd.f32 1.0, %v3148_v36  ;;  %v2265_v45 = vmul.f32 -1.442695, %v796_v38 }
 0x180   :  { %v3152_v44 = vpop.eup %3151  ;;  %2002 = vst.msk [vmem:[%s4798_s3 + $0x108] sm:$0xff] %vm149_vm2, %v3150_v42  ;;  %3171 = vrcp.f32 %v1630_v37  ;;  %v2328_v46 = vmul.f32 -1.442695, %v1111_v40  ;;  %v800_v47 = vpop.f32.mrb[82].mxu0 }
 0x181   :  { %v3154_v4 = vpop.eup %3153  ;;  %2065 = vst.msk [vmem:[%s4798_s3 + $0x300] sm:$0xff] %vm149_vm2, %v3152_v44  ;;  %3173 = vrcp.f32 %v1693_v43  ;;  %v1115_v48 = vpop.f32.mrb[82].mxu1  ;;  %v801_v52 = vadd.f32 %v4362_v18, %v800_v47 }
 0x182   :  { %v3156_v50 = vpop.eup %3155  ;;  %v1631_v51 = vadd.f32 1.0, %v3154_v4  ;;  %3175 = vpow2.f32 %v2327_v33  ;;  %v2609_v53 = vpop.f32.mrb[83].mxu0  ;;  %v1116_v54 = vadd.f32 %v4362_v18, %v1115_v48 }
 0x183   :  { %v2798_v55 = vpop.f32.mrb[83].mxu1  ;;  %v3158_v56 = vpop.eup %3157  ;;  %v1694_v57 = vadd.f32 1.0, %v3156_v50  ;;  %3177 = vpow2.f32 %v2265_v45  ;;  %v2266_v59 = vmul.f32 -1.442695, %v801_v52 }
 0x184   :  { %v3160_v58 = vpop.eup %3159  ;;  %2003 = vst.msk [vmem:[%s4798_s3 + $0x110] sm:$0xff] %vm149_vm2, %v3158_v56  ;;  %3179 = vrcp.f32 %v1631_v51  ;;  %v2329_v61 = vmul.f32 -1.442695, %v1116_v54  ;;  %v805_v62 = vpop.f32.mrb[84].mxu0 }
 0x185   :  { %v3162_v60 = vpop.eup %3161  ;;  %2066 = vst.msk [vmem:[%s4798_s3 + $0x308] sm:$0xff] %vm149_vm2, %v3160_v58  ;;  %3181 = vrcp.f32 %v1694_v57  ;;  %v1120_v63 = vpop.f32.mrb[84].mxu1  ;;  %v806_v2 = vadd.f32 %v4362_v18, %v805_v62 }
 0x186   :  { %v3164_v0 = vpop.eup %3163  ;;  %v1632_v1 = vadd.f32 1.0, %v3162_v60  ;;  %3183 = vpow2.f32 %v2328_v46  ;;  %v2612_v3 = vpop.f32.mrb[85].mxu0  ;;  %v1121_v5 = vadd.f32 %v4362_v18, %v1120_v63 }
 0x187   :  { %v2801_v6 = vpop.f32.mrb[85].mxu1  ;;  %v3166_v7 = vpop.eup %3165  ;;  %v1695_v8 = vadd.f32 1.0, %v3164_v0  ;;  %3185 = vpow2.f32 %v2266_v59  ;;  %v2267_v10 = vmul.f32 -1.442695, %v806_v2 }
 0x188   :  { %v3168_v9 = vpop.eup %3167  ;;  %2004 = vst.msk [vmem:[%s4798_s3 + $0x118] sm:$0xff] %vm149_vm2, %v3166_v7  ;;  %3187 = vrcp.f32 %v1632_v1  ;;  %v2330_v13 = vmul.f32 -1.442695, %v1121_v5  ;;  %v810_v14 = vpop.f32.mrb[86].mxu0 }
 0x189   :  { %v3170_v11 = vpop.eup %3169  ;;  %3189 = vrcp.f32 %v1695_v8  ;;  %v1633_v12 = vadd.f32 1.0, %v3168_v9  ;;  %v1125_v15 = vpop.f32.mrb[86].mxu1  ;;  %v811_v17 = vadd.f32 %v4362_v18, %v810_v14 }
 0x18a   :  { %v3172_v16 = vpop.eup %3171  ;;  %2067 = vst.msk [vmem:[%s4798_s3 + $0x310] sm:$0xff] %vm149_vm2, %v3170_v11  ;;  %3191 = vpow2.f32 %v2329_v61  ;;  %v2615_v19 = vpop.f32.mrb[87].mxu0  ;;  %v1126_v20 = vadd.f32 %v4362_v18, %v1125_v15 }
 0x18b   :  { %v2804_v21 = vpop.f32.mrb[87].mxu1  ;;  %v3174_v22 = vpop.eup %3173  ;;  %2005 = vst.msk [vmem:[%s4798_s3 + $0x120] sm:$0xff] %vm149_vm2, %v3172_v16  ;;  %3193 = vrcp.f32 %v1633_v12  ;;  %v2268_v24 = vmul.f32 -1.442695, %v811_v17 }
 0x18c   :  { %v3176_v23 = vpop.eup %3175  ;;  %2068 = vst.msk [vmem:[%s4798_s3 + $0x318] sm:$0xff] %vm149_vm2, %v3174_v22  ;;  %3195 = vpow2.f32 %v2267_v10  ;;  %v2331_v27 = vmul.f32 -1.442695, %v1126_v20  ;;  %v815_v49 = vpop.f32.mrb[88].mxu0 }
 0x18d   :  { %v3178_v25 = vpop.eup %3177  ;;  %v1696_v26 = vadd.f32 1.0, %v3176_v23  ;;  %3197 = vpow2.f32 %v2330_v13  ;;  %v1130_v28 = vpop.f32.mrb[88].mxu1  ;;  %v816_v31 = vadd.f32 %v4362_v18, %v815_v49 }
 0x18e   :  { %v3180_v29 = vpop.eup %3179  ;;  %v1634_v30 = vadd.f32 1.0, %v3178_v25  ;;  %3199 = vpow2.f32 %v2268_v24  ;;  %v2618_v32 = vpop.f32.mrb[89].mxu0  ;;  %v1131_v33 = vadd.f32 %v4362_v18, %v1130_v28 }
 0x18f   :  { %v2807_v34 = vpop.f32.mrb[89].mxu1  ;;  %v3182_v35 = vpop.eup %3181  ;;  %2006 = vst.msk [vmem:[%s4798_s3 + $0x128] sm:$0xff] %vm149_vm2, %v3180_v29  ;;  %3201 = vrcp.f32 %v1696_v26  ;;  %v2269_v37 = vmul.f32 -1.442695, %v816_v31 }
 0x190   :  { %v3184_v36 = vpop.eup %3183  ;;  %2069 = vst.msk [vmem:[%s4798_s3 + $0x320] sm:$0xff] %vm149_vm2, %v3182_v35  ;;  %3203 = vrcp.f32 %v1634_v30  ;;  %v2332_v40 = vmul.f32 -1.442695, %v1131_v33  ;;  %v820_v41 = vpop.f32.mrb[90].mxu0 }
 0x191   :  { %v3186_v38 = vpop.eup %3185  ;;  %v1697_v39 = vadd.f32 1.0, %v3184_v36  ;;  %3205 = vpow2.f32 %v2331_v27  ;;  %v1135_v42 = vpop.f32.mrb[90].mxu1  ;;  %v821_v45 = vadd.f32 %v4362_v18, %v820_v41 }
 0x192   :  { %v3188_v43 = vpop.eup %3187  ;;  %v1635_v44 = vadd.f32 1.0, %v3186_v38  ;;  %3207 = vpow2.f32 %v2269_v37  ;;  %v2621_v4 = vpop.f32.mrb[91].mxu0  ;;  %v1136_v46 = vadd.f32 %v4362_v18, %v1135_v42 }
 0x193   :  { %v2810_v47 = vpop.f32.mrb[91].mxu1  ;;  %v3190_v48 = vpop.eup %3189  ;;  %2007 = vst.msk [vmem:[%s4798_s3 + $0x130] sm:$0xff] %vm149_vm2, %v3188_v43  ;;  %3209 = vrcp.f32 %v1697_v39  ;;  %v2270_v51 = vmul.f32 -1.442695, %v821_v45 }
 0x194   :  { %v3192_v50 = vpop.eup %3191  ;;  %2070 = vst.msk [vmem:[%s4798_s3 + $0x328] sm:$0xff] %vm149_vm2, %v3190_v48  ;;  %3211 = vrcp.f32 %v1635_v44  ;;  %v2333_v52 = vmul.f32 -1.442695, %v1136_v46  ;;  %v825_v55 = vpop.f32.mrb[92].mxu0 }
 0x195   :  { %v3194_v53 = vpop.eup %3193  ;;  %v1698_v54 = vadd.f32 1.0, %v3192_v50  ;;  %3213 = vpow2.f32 %v2332_v40  ;;  %v1140_v56 = vpop.f32.mrb[92].mxu1  ;;  %v826_v58 = vadd.f32 %v4362_v18, %v825_v55 }
 0x196   :  { %v3196_v57 = vpop.eup %3195  ;;  %2008 = vst.msk [vmem:[%s4798_s3 + $0x138] sm:$0xff] %vm149_vm2, %v3194_v53  ;;  %3215 = vpow2.f32 %v2270_v51  ;;  %v2624_v59 = vpop.f32.mrb[93].mxu0  ;;  %v1141_v60 = vadd.f32 %v4362_v18, %v1140_v56 }
 0x197   :  { %v2813_v61 = vpop.f32.mrb[93].mxu1  ;;  %v3198_v62 = vpop.eup %3197  ;;  %3217 = vrcp.f32 %v1698_v54  ;;  %v1636_v63 = vadd.f32 1.0, %v3196_v57  ;;  %v2271_v2 = vmul.f32 -1.442695, %v826_v58 }
 0x198   :  { %v3200_v0 = vpop.eup %3199  ;;  %v1699_v1 = vadd.f32 1.0, %v3198_v62  ;;  %3219 = vpow2.f32 %v2333_v52  ;;  %v2334_v6 = vmul.f32 -1.442695, %v1141_v60  ;;  %v830_v7 = vpop.f32.mrb[94].mxu0 }
 0x199   :  { %v3202_v3 = vpop.eup %3201  ;;  %3221 = vrcp.f32 %v1636_v63  ;;  %v1637_v5 = vadd.f32 1.0, %v3200_v0  ;;  %v1145_v8 = vpop.f32.mrb[94].mxu1  ;;  %v831_v10 = vadd.f32 %v4362_v18, %v830_v7 }
 0x19a   :  { %v3204_v9 = vpop.eup %3203  ;;  %2071 = vst.msk [vmem:[%s4798_s3 + $0x330] sm:$0xff] %vm149_vm2, %v3202_v3  ;;  %3223 = vrcp.f32 %v1699_v1  ;;  %v2627_v11 = vpop.f32.mrb[95].mxu0  ;;  %v1146_v12 = vadd.f32 %v4362_v18, %v1145_v8 }
 0x19b   :  { %v2816_v13 = vpop.f32.mrb[95].mxu1  ;;  %v3206_v14 = vpop.eup %3205  ;;  %2009 = vst.msk [vmem:[%s4798_s3 + $0x140] sm:$0xff] %vm149_vm2, %v3204_v9  ;;  %3225 = vrcp.f32 %v1637_v5  ;;  %v2272_v17 = vmul.f32 -1.442695, %v831_v10 }
 0x19c   :  { %v3208_v15 = vpop.eup %3207  ;;  %v1700_v16 = vadd.f32 1.0, %v3206_v14  ;;  %3227 = vpow2.f32 %v2271_v2  ;;  %v2335_v21 = vmul.f32 -1.442695, %v1146_v12  ;;  %v835_v22 = vpop.f32.mrb[96].mxu0 }
 0x19d   :  { %v3210_v19 = vpop.eup %3209  ;;  %v1638_v20 = vadd.f32 1.0, %v3208_v15  ;;  %3229 = vpow2.f32 %v2334_v6  ;;  %v1150_v23 = vpop.f32.mrb[96].mxu1  ;;  %v836_v25 = vadd.f32 %v4362_v18, %v835_v22 }
 0x19e   :  { %v3212_v24 = vpop.eup %3211  ;;  %2072 = vst.msk [vmem:[%s4798_s3 + $0x338] sm:$0xff] %vm149_vm2, %v3210_v19  ;;  %3231 = vrcp.f32 %v1700_v16  ;;  %v2630_v26 = vpop.f32.mrb[97].mxu0  ;;  %v1151_v27 = vadd.f32 %v4362_v18, %v1150_v23 }
 0x19f   :  { %v2819_v49 = vpop.f32.mrb[97].mxu1  ;;  %v3214_v28 = vpop.eup %3213  ;;  %2010 = vst.msk [vmem:[%s4798_s3 + $0x148] sm:$0xff] %vm149_vm2, %v3212_v24  ;;  %3233 = vrcp.f32 %v1638_v20  ;;  %v2273_v31 = vmul.f32 -1.442695, %v836_v25 }
 0x1a0   :  { %v3216_v29 = vpop.eup %3215  ;;  %v1701_v30 = vadd.f32 1.0, %v3214_v28  ;;  %3235 = vpow2.f32 %v2272_v17  ;;  %v840_v34 = vpop.f32.mrb[98].mxu0  ;;  %v2336_v37 = vmul.f32 -1.442695, %v1151_v27 }
 0x1a1   :  { %v3218_v32 = vpop.eup %3217  ;;  %v1639_v33 = vadd.f32 1.0, %v3216_v29  ;;  %3237 = vpow2.f32 %v2335_v21  ;;  %v1155_v35 = vpop.f32.mrb[98].mxu1  ;;  %v841_v38 = vadd.f32 %v4362_v18, %v840_v34 }
 0x1a2   :  { %v3220_v36 = vpop.eup %3219  ;;  %2073 = vst.msk [vmem:[%s4798_s3 + $0x340] sm:$0xff] %vm149_vm2, %v3218_v32  ;;  %3239 = vrcp.f32 %v1701_v30  ;;  %v2633_v39 = vpop.f32.mrb[99].mxu0  ;;  %v1156_v40 = vadd.f32 %v4362_v18, %v1155_v35 }
 0x1a3   :  { %v2822_v41 = vpop.f32.mrb[99].mxu1  ;;  %v3222_v42 = vpop.eup %3221  ;;  %3241 = vrcp.f32 %v1639_v33  ;;  %v1702_v43 = vadd.f32 1.0, %v3220_v36  ;;  %v2274_v45 = vmul.f32 -1.442695, %v841_v38 }
 0x1a4   :  { %v3224_v44 = vpop.eup %3223  ;;  %2011 = vst.msk [vmem:[%s4798_s3 + $0x150] sm:$0xff] %vm149_vm2, %v3222_v42  ;;  %3243 = vpow2.f32 %v2273_v31  ;;  %v2337_v4 = vmul.f32 -1.442695, %v1156_v40  ;;  %v845_v47 = vpop.f32.mrb[100].mxu0 }
 0x1a5   :  { %v3226_v46 = vpop.eup %3225  ;;  %2074 = vst.msk [vmem:[%s4798_s3 + $0x348] sm:$0xff] %vm149_vm2, %v3224_v44  ;;  %3245 = vrcp.f32 %v1702_v43  ;;  %v1160_v48 = vpop.f32.mrb[100].mxu1  ;;  %v846_v51 = vadd.f32 %v4362_v18, %v845_v47 }
 0x1a6   :  { %v3228_v50 = vpop.eup %3227  ;;  %2012 = vst.msk [vmem:[%s4798_s3 + $0x158] sm:$0xff] %vm149_vm2, %v3226_v46  ;;  %3247 = vpow2.f32 %v2336_v37  ;;  %v2636_v52 = vpop.f32.mrb[101].mxu0  ;;  %v1161_v53 = vadd.f32 %v4362_v18, %v1160_v48  ;;  %v4626_v18 = vld [vmem:[%s4797_s2] ss:$0 sm:$0xff] }
 0x1a7   :  { %v2825_v54 = vpop.f32.mrb[101].mxu1  ;;  %v3230_v55 = vpop.eup %3229  ;;  %v1640_v56 = vadd.f32 1.0, %v3228_v50  ;;  %3249 = vpow2.f32 %v2274_v45  ;;  %v2275_v59 = vmul.f32 -1.442695, %v846_v51 }
 0x1a8   :  { %v3232_v57 = vpop.eup %3231  ;;  %v1703_v58 = vadd.f32 1.0, %v3230_v55  ;;  %3251 = vpow2.f32 %v2337_v4  ;;  %v2338_v60 = vmul.f32 -1.442695, %v1161_v53  ;;  %v850_v62 = vpop.f32.mrb[102].mxu0 }
 0x1a9   :  { %v3234_v61 = vpop.eup %3233  ;;  %2075 = vst.msk [vmem:[%s4798_s3 + $0x350] sm:$0xff] %vm149_vm2, %v3232_v57  ;;  %3253 = vrcp.f32 %v1640_v56  ;;  %v1165_v63 = vpop.f32.mrb[102].mxu1  ;;  %v851_v1 = vadd.f32 %v4626_v18, %v850_v62 }
 0x1aa   :  { %v3236_v0 = vpop.eup %3235  ;;  %2013 = vst.msk [vmem:[%s4798_s3 + $0x160] sm:$0xff] %vm149_vm2, %v3234_v61  ;;  %3255 = vrcp.f32 %v1703_v58  ;;  %v2639_v2 = vpop.f32.mrb[103].mxu0  ;;  %v1166_v3 = vadd.f32 %v4626_v18, %v1165_v63 }
 0x1ab   :  { %v2828_v5 = vpop.f32.mrb[103].mxu1  ;;  %v3238_v6 = vpop.eup %3237  ;;  %v1641_v7 = vadd.f32 1.0, %v3236_v0  ;;  %3257 = vpow2.f32 %v2275_v59  ;;  %v2276_v10 = vmul.f32 -1.442695, %v851_v1 }
 0x1ac   :  { %v3240_v8 = vpop.eup %3239  ;;  %v1704_v9 = vadd.f32 1.0, %v3238_v6  ;;  %3259 = vpow2.f32 %v2338_v60  ;;  %v2339_v11 = vmul.f32 -1.442695, %v1166_v3  ;;  %v855_v13 = vpop.f32.mrb[104].mxu0 }
 0x1ad   :  { %v3242_v12 = vpop.eup %3241  ;;  %2076 = vst.msk [vmem:[%s4798_s3 + $0x358] sm:$0xff] %vm149_vm2, %v3240_v8  ;;  %3261 = vrcp.f32 %v1641_v7  ;;  %v1170_v14 = vpop.f32.mrb[104].mxu1  ;;  %v856_v16 = vadd.f32 %v4626_v18, %v855_v13 }
 0x1ae   :  { %v3244_v15 = vpop.eup %3243  ;;  %2014 = vst.msk [vmem:[%s4798_s3 + $0x168] sm:$0xff] %vm149_vm2, %v3242_v12  ;;  %3263 = vrcp.f32 %v1704_v9  ;;  %v2642_v17 = vpop.f32.mrb[105].mxu0  ;;  %v1171_v19 = vadd.f32 %v4626_v18, %v1170_v14 }
 0x1af   :  { %v2831_v20 = vpop.f32.mrb[105].mxu1  ;;  %v3246_v21 = vpop.eup %3245  ;;  %v1642_v22 = vadd.f32 1.0, %v3244_v15  ;;  %3265 = vpow2.f32 %v2276_v10  ;;  %v2277_v24 = vmul.f32 -1.442695, %v856_v16 }
 0x1b0   :  { %v3248_v23 = vpop.eup %3247  ;;  %2077 = vst.msk [vmem:[%s4798_s3 + $0x360] sm:$0xff] %vm149_vm2, %v3246_v21  ;;  %3267 = vpow2.f32 %v2339_v11  ;;  %v2340_v27 = vmul.f32 -1.442695, %v1171_v19  ;;  %v860_v49 = vpop.f32.mrb[106].mxu0 }
 0x1b1   :  { %v3250_v25 = vpop.eup %3249  ;;  %3269 = vrcp.f32 %v1642_v22  ;;  %v1705_v26 = vadd.f32 1.0, %v3248_v23  ;;  %v1175_v28 = vpop.f32.mrb[106].mxu1  ;;  %v861_v31 = vadd.f32 %v4626_v18, %v860_v49 }
 0x1b2   :  { %v3252_v29 = vpop.eup %3251  ;;  %v1643_v30 = vadd.f32 1.0, %v3250_v25  ;;  %3271 = vpow2.f32 %v2277_v24  ;;  %v2645_v32 = vpop.f32.mrb[107].mxu0  ;;  %v1176_v33 = vadd.f32 %v4626_v18, %v1175_v28 }
 0x1b3   :  { %v2834_v34 = vpop.f32.mrb[107].mxu1  ;;  %v3254_v35 = vpop.eup %3253  ;;  %3273 = vrcp.f32 %v1705_v26  ;;  %v1706_v36 = vadd.f32 1.0, %v3252_v29  ;;  %v2278_v38 = vmul.f32 -1.442695, %v861_v31 }
 0x1b4   :  { %v3256_v37 = vpop.eup %3255  ;;  %2015 = vst.msk [vmem:[%s4798_s3 + $0x170] sm:$0xff] %vm149_vm2, %v3254_v35  ;;  %3275 = vrcp.f32 %v1643_v30  ;;  %v2341_v40 = vmul.f32 -1.442695, %v1176_v33  ;;  %v865_v41 = vpop.f32.mrb[108].mxu0 }
 0x1b5   :  { %v3258_v39 = vpop.eup %3257  ;;  %2078 = vst.msk [vmem:[%s4798_s3 + $0x368] sm:$0xff] %vm149_vm2, %v3256_v37  ;;  %3277 = vrcp.f32 %v1706_v36  ;;  %v1180_v42 = vpop.f32.mrb[108].mxu1  ;;  %v866_v45 = vadd.f32 %v4626_v18, %v865_v41 }
 0x1b6   :  { %v3260_v43 = vpop.eup %3259  ;;  %v1644_v44 = vadd.f32 1.0, %v3258_v39  ;;  %3279 = vpow2.f32 %v2340_v27  ;;  %v2648_v4 = vpop.f32.mrb[109].mxu0  ;;  %v1181_v46 = vadd.f32 %v4626_v18, %v1180_v42 }
 0x1b7   :  { %v2837_v47 = vpop.f32.mrb[109].mxu1  ;;  %v3262_v48 = vpop.eup %3261  ;;  %v1707_v50 = vadd.f32 1.0, %v3260_v43  ;;  %3281 = vpow2.f32 %v2278_v38  ;;  %v2279_v52 = vmul.f32 -1.442695, %v866_v45 }
 0x1b8   :  { %v3264_v51 = vpop.eup %3263  ;;  %2016 = vst.msk [vmem:[%s4798_s3 + $0x178] sm:$0xff] %vm149_vm2, %v3262_v48  ;;  %3283 = vrcp.f32 %v1644_v44  ;;  %v2342_v54 = vmul.f32 -1.442695, %v1181_v46  ;;  %v870_v55 = vpop.f32.mrb[110].mxu0 }
 0x1b9   :  { %v3266_v53 = vpop.eup %3265  ;;  %2079 = vst.msk [vmem:[%s4798_s3 + $0x370] sm:$0xff] %vm149_vm2, %v3264_v51  ;;  %3285 = vrcp.f32 %v1707_v50  ;;  %v1185_v56 = vpop.f32.mrb[110].mxu1  ;;  %v871_v59 = vadd.f32 %v4626_v18, %v870_v55 }
 0x1ba   :  { %v3268_v57 = vpop.eup %3267  ;;  %v1645_v58 = vadd.f32 1.0, %v3266_v53  ;;  %3287 = vpow2.f32 %v2341_v40  ;;  %v2651_v60 = vpop.f32.mrb[111].mxu0  ;;  %v1186_v61 = vadd.f32 %v4626_v18, %v1185_v56 }
 0x1bb   :  { %v2840_v62 = vpop.f32.mrb[111].mxu1  ;;  %v3270_v63 = vpop.eup %3269  ;;  %v1708_v0 = vadd.f32 1.0, %v3268_v57  ;;  %3289 = vpow2.f32 %v2279_v52  ;;  %v2280_v2 = vmul.f32 -1.442695, %v871_v59 }
 0x1bc   :  { %v3272_v1 = vpop.eup %3271  ;;  %2017 = vst.msk [vmem:[%s4798_s3 + $0x180] sm:$0xff] %vm149_vm2, %v3270_v63  ;;  %3291 = vrcp.f32 %v1645_v58  ;;  %v2343_v6 = vmul.f32 -1.442695, %v1186_v61  ;;  %v875_v7 = vpop.f32.mrb[112].mxu0 }
 0x1bd   :  { %v3274_v3 = vpop.eup %3273  ;;  %3293 = vrcp.f32 %v1708_v0  ;;  %v1646_v5 = vadd.f32 1.0, %v3272_v1  ;;  %v1190_v8 = vpop.f32.mrb[112].mxu1  ;;  %v876_v10 = vadd.f32 %v4626_v18, %v875_v7 }
 0x1be   :  { %v3276_v9 = vpop.eup %3275  ;;  %2080 = vst.msk [vmem:[%s4798_s3 + $0x378] sm:$0xff] %vm149_vm2, %v3274_v3  ;;  %3295 = vpow2.f32 %v2342_v54  ;;  %v2654_v11 = vpop.f32.mrb[113].mxu0  ;;  %v1191_v12 = vadd.f32 %v4626_v18, %v1190_v8 }
 0x1bf   :  { %v2843_v13 = vpop.f32.mrb[113].mxu1  ;;  %v3278_v14 = vpop.eup %3277  ;;  %2018 = vst.msk [vmem:[%s4798_s3 + $0x188] sm:$0xff] %vm149_vm2, %v3276_v9  ;;  %3297 = vrcp.f32 %v1646_v5  ;;  %v2281_v16 = vmul.f32 -1.442695, %v876_v10 }
 0x1c0   :  { %v3280_v15 = vpop.eup %3279  ;;  %2081 = vst.msk [vmem:[%s4798_s3 + $0x380] sm:$0xff] %vm149_vm2, %v3278_v14  ;;  %3299 = vpow2.f32 %v2280_v2  ;;  %v2344_v20 = vmul.f32 -1.442695, %v1191_v12  ;;  %v880_v21 = vpop.f32.mrb[114].mxu0 }
 0x1c1   :  { %v3282_v17 = vpop.eup %3281  ;;  %v1709_v19 = vadd.f32 1.0, %v3280_v15  ;;  %3301 = vpow2.f32 %v2343_v6  ;;  %v1195_v22 = vpop.f32.mrb[114].mxu1  ;;  %v881_v25 = vadd.f32 %v4626_v18, %v880_v21 }
 0x1c2   :  { %v3284_v23 = vpop.eup %3283  ;;  %v1647_v24 = vadd.f32 1.0, %v3282_v17  ;;  %3303 = vpow2.f32 %v2281_v16  ;;  %v2657_v26 = vpop.f32.mrb[115].mxu0  ;;  %v1196_v27 = vadd.f32 %v4626_v18, %v1195_v22 }
 0x1c3   :  { %v2846_v49 = vpop.f32.mrb[115].mxu1  ;;  %v3286_v28 = vpop.eup %3285  ;;  %2019 = vst.msk [vmem:[%s4798_s3 + $0x190] sm:$0xff] %vm149_vm2, %v3284_v23  ;;  %3305 = vrcp.f32 %v1709_v19  ;;  %v2282_v30 = vmul.f32 -1.442695, %v881_v25 }
 0x1c4   :  { %v3288_v29 = vpop.eup %3287  ;;  %2082 = vst.msk [vmem:[%s4798_s3 + $0x388] sm:$0xff] %vm149_vm2, %v3286_v28  ;;  %3307 = vrcp.f32 %v1647_v24  ;;  %v2345_v33 = vmul.f32 -1.442695, %v1196_v27  ;;  %v885_v34 = vpop.f32.mrb[116].mxu0 }
 0x1c5   :  { %v3290_v31 = vpop.eup %3289  ;;  %v1710_v32 = vadd.f32 1.0, %v3288_v29  ;;  %3309 = vpow2.f32 %v2344_v20  ;;  %v1200_v35 = vpop.f32.mrb[116].mxu1  ;;  %v886_v38 = vadd.f32 %v4626_v18, %v885_v34 }
 0x1c6   :  { %v3292_v36 = vpop.eup %3291  ;;  %v1648_v37 = vadd.f32 1.0, %v3290_v31  ;;  %3311 = vpow2.f32 %v2282_v30  ;;  %v2660_v39 = vpop.f32.mrb[117].mxu0  ;;  %v1201_v40 = vadd.f32 %v4626_v18, %v1200_v35 }
 0x1c7   :  { %v2849_v41 = vpop.f32.mrb[117].mxu1  ;;  %v3294_v42 = vpop.eup %3293  ;;  %2020 = vst.msk [vmem:[%s4798_s3 + $0x198] sm:$0xff] %vm149_vm2, %v3292_v36  ;;  %3313 = vrcp.f32 %v1710_v32  ;;  %v2283_v44 = vmul.f32 -1.442695, %v886_v38 }
 0x1c8   :  { %v3296_v43 = vpop.eup %3295  ;;  %2083 = vst.msk [vmem:[%s4798_s3 + $0x390] sm:$0xff] %vm149_vm2, %v3294_v42  ;;  %3315 = vrcp.f32 %v1648_v37  ;;  %v2346_v45 = vmul.f32 -1.442695, %v1201_v40  ;;  %v890_v47 = vpop.f32.mrb[118].mxu0 }
 0x1c9   :  { %v3298_v4 = vpop.eup %3297  ;;  %v1711_v46 = vadd.f32 1.0, %v3296_v43  ;;  %3317 = vpow2.f32 %v2345_v33  ;;  %v1205_v48 = vpop.f32.mrb[118].mxu1  ;;  %v891_v51 = vadd.f32 %v4626_v18, %v890_v47 }
 0x1ca   :  { %v3300_v50 = vpop.eup %3299  ;;  %2021 = vst.msk [vmem:[%s4798_s3 + $0x1a0] sm:$0xff] %vm149_vm2, %v3298_v4  ;;  %3319 = vpow2.f32 %v2283_v44  ;;  %v2663_v52 = vpop.f32.mrb[119].mxu0  ;;  %v1206_v53 = vadd.f32 %v4626_v18, %v1205_v48 }
 0x1cb   :  { %v2852_v54 = vpop.f32.mrb[119].mxu1  ;;  %v3302_v55 = vpop.eup %3301  ;;  %3321 = vrcp.f32 %v1711_v46  ;;  %v1649_v56 = vadd.f32 1.0, %v3300_v50  ;;  %v2284_v59 = vmul.f32 -1.442695, %v891_v51 }
 0x1cc   :  { %v3304_v57 = vpop.eup %3303  ;;  %v1712_v58 = vadd.f32 1.0, %v3302_v55  ;;  %3323 = vpow2.f32 %v2346_v45  ;;  %v2347_v62 = vmul.f32 -1.442695, %v1206_v53  ;;  %v895_v63 = vpop.f32.mrb[120].mxu0 }
 0x1cd   :  { %v3306_v60 = vpop.eup %3305  ;;  %3325 = vrcp.f32 %v1649_v56  ;;  %v1650_v61 = vadd.f32 1.0, %v3304_v57  ;;  %v1210_v0 = vpop.f32.mrb[120].mxu1  ;;  %v896_v2 = vadd.f32 %v4626_v18, %v895_v63 }
 0x1ce   :  { %v3308_v1 = vpop.eup %3307  ;;  %2084 = vst.msk [vmem:[%s4798_s3 + $0x398] sm:$0xff] %vm149_vm2, %v3306_v60  ;;  %3327 = vrcp.f32 %v1712_v58  ;;  %v2666_v3 = vpop.f32.mrb[121].mxu0  ;;  %v1211_v5 = vadd.f32 %v4626_v18, %v1210_v0 }
 0x1cf   :  { %v2855_v6 = vpop.f32.mrb[121].mxu1  ;;  %v3310_v7 = vpop.eup %3309  ;;  %2022 = vst.msk [vmem:[%s4798_s3 + $0x1a8] sm:$0xff] %vm149_vm2, %v3308_v1  ;;  %3329 = vrcp.f32 %v1650_v61  ;;  %v2285_v10 = vmul.f32 -1.442695, %v896_v2 }
 0x1d0   :  { %v3312_v8 = vpop.eup %3311  ;;  %v1713_v9 = vadd.f32 1.0, %v3310_v7  ;;  %3331 = vpow2.f32 %v2284_v59  ;;  %v2348_v13 = vmul.f32 -1.442695, %v1211_v5  ;;  %v900_v14 = vpop.f32.mrb[122].mxu0 }
 0x1d1   :  { %v3314_v11 = vpop.eup %3313  ;;  %v1651_v12 = vadd.f32 1.0, %v3312_v8  ;;  %3333 = vpow2.f32 %v2347_v62  ;;  %v1215_v15 = vpop.f32.mrb[122].mxu1  ;;  %v901_v17 = vadd.f32 %v4626_v18, %v900_v14 }
 0x1d2   :  { %v3316_v16 = vpop.eup %3315  ;;  %2085 = vst.msk [vmem:[%s4798_s3 + $0x3a0] sm:$0xff] %vm149_vm2, %v3314_v11  ;;  %3335 = vrcp.f32 %v1713_v9  ;;  %v2669_v19 = vpop.f32.mrb[123].mxu0  ;;  %v1216_v20 = vadd.f32 %v4626_v18, %v1215_v15 }
 0x1d3   :  { %v2858_v21 = vpop.f32.mrb[123].mxu1  ;;  %v3318_v22 = vpop.eup %3317  ;;  %2023 = vst.msk [vmem:[%s4798_s3 + $0x1b0] sm:$0xff] %vm149_vm2, %v3316_v16  ;;  %3337 = vrcp.f32 %v1651_v12  ;;  %v2286_v25 = vmul.f32 -1.442695, %v901_v17 }
 0x1d4   :  { %v3320_v23 = vpop.eup %3319  ;;  %v1714_v24 = vadd.f32 1.0, %v3318_v22  ;;  %3339 = vpow2.f32 %v2285_v10  ;;  %v905_v49 = vpop.f32.mrb[124].mxu0  ;;  %v2349_v29 = vmul.f32 -1.442695, %v1216_v20 }
 0x1d5   :  { %v3322_v26 = vpop.eup %3321  ;;  %v1652_v27 = vadd.f32 1.0, %v3320_v23  ;;  %3341 = vpow2.f32 %v2348_v13  ;;  %v906_v30 = vadd.f32 %v4626_v18, %v905_v49  ;;  %v2672_v31 = vpop.f32.mrb[125].mxu0 }
 0x1d6   :  { %v3324_v28 = vpop.eup %3323  ;;  %2086 = vst.msk [vmem:[%s4798_s3 + $0x3a8] sm:$0xff] %vm149_vm2, %v3322_v26  ;;  %3343 = vrcp.f32 %v1714_v24 }
 0x1d7   :  { %v3326_v32 = vpop.eup %3325  ;;  %3345 = vrcp.f32 %v1652_v27  ;;  %v1715_v33 = vadd.f32 1.0, %v3324_v28  ;;  %v2287_v35 = vmul.f32 -1.442695, %v906_v30 }
 0x1d8   :  { %v3328_v34 = vpop.eup %3327  ;;  %2024 = vst.msk [vmem:[%s4798_s3 + $0x1b8] sm:$0xff] %vm149_vm2, %v3326_v32  ;;  %3347 = vpow2.f32 %v2286_v25 }
 0x1d9   :  { %v3330_v36 = vpop.eup %3329  ;;  %2087 = vst.msk [vmem:[%s4798_s3 + $0x3b0] sm:$0xff] %vm149_vm2, %v3328_v34  ;;  %3349 = vrcp.f32 %v1715_v33 }
 0x1da   :  { %v3332_v18 = vpop.eup %3331  ;;  %2025 = vst.msk [vmem:[%s4798_s3 + $0x1c0] sm:$0xff] %vm149_vm2, %v3330_v36  ;;  %3351 = vpow2.f32 %v2349_v29 }
 0x1db   :  { %v3334_v37 = vpop.eup %3333  ;;  %v1653_v38 = vadd.f32 1.0, %v3332_v18  ;;  %3353 = vpow2.f32 %v2287_v35 }
 0x1dc   :  { %v3336_v39 = vpop.eup %3335  ;;  %v1716_v40 = vadd.f32 1.0, %v3334_v37 }
 0x1dd   :  { %v3338_v41 = vpop.eup %3337  ;;  %2088 = vst.msk [vmem:[%s4798_s3 + $0x3b8] sm:$0xff] %vm149_vm2, %v3336_v39  ;;  %3355 = vrcp.f32 %v1653_v38 }
 0x1de   :  { %v3340_v42 = vpop.eup %3339  ;;  %2026 = vst.msk [vmem:[%s4798_s3 + $0x1c8] sm:$0xff] %vm149_vm2, %v3338_v41  ;;  %3357 = vrcp.f32 %v1716_v40 }
 0x1df   :  { %v3342_v43 = vpop.eup %3341  ;;  %v1654_v44 = vadd.f32 1.0, %v3340_v42 }
 0x1e0   :  { %v3344_v45 = vpop.eup %3343  ;;  %v1717_v4 = vadd.f32 1.0, %v3342_v43 }
 0x1e1   :  { %v3346_v46 = vpop.eup %3345  ;;  %2089 = vst.msk [vmem:[%s4798_s3 + $0x3c0] sm:$0xff] %vm149_vm2, %v3344_v45  ;;  %3359 = vrcp.f32 %v1654_v44 }
 0x1e2   :  { %v3348_v47 = vpop.eup %3347  ;;  %2027 = vst.msk [vmem:[%s4798_s3 + $0x1d0] sm:$0xff] %vm149_vm2, %v3346_v46  ;;  %3361 = vrcp.f32 %v1717_v4 }
 0x1e3   :  { %v3350_v48 = vpop.eup %3349  ;;  %v1655_v50 = vadd.f32 1.0, %v3348_v47 }
 0x1e4   :  { %v3352_v51 = vpop.eup %3351  ;;  %2090 = vst.msk [vmem:[%s4798_s3 + $0x3c8] sm:$0xff] %vm149_vm2, %v3350_v48 }
 0x1e5   :  { %v3354_v52 = vpop.eup %3353  ;;  %3363 = vrcp.f32 %v1655_v50  ;;  %v1718_v53 = vadd.f32 1.0, %v3352_v51 }
 0x1e6   :  { %v1656_v54 = vadd.f32 1.0, %v3354_v52 }
 0x1e7   :  { %v3356_v55 = vpop.eup %3355  ;;  %3365 = vrcp.f32 %v1718_v53 }
 0x1e8   :  { %v3358_v56 = vpop.eup %3357  ;;  %2028 = vst.msk [vmem:[%s4798_s3 + $0x1d8] sm:$0xff] %vm149_vm2, %v3356_v55  ;;  %3367 = vrcp.f32 %v1656_v54 }
 0x1e9   :  { %2091 = vst.msk [vmem:[%s4798_s3 + $0x3d0] sm:$0xff] %vm149_vm2, %v3358_v56 }
 0x1eb   :  { %v3360_v57 = vpop.eup %3359 }
 0x1ec   :  { %v3362_v58 = vpop.eup %3361  ;;  %2029 = vst.msk [vmem:[%s4798_s3 + $0x1e0] sm:$0xff] %vm149_vm2, %v3360_v57 }
 0x1ed   :  { %2092 = vst.msk [vmem:[%s4798_s3 + $0x3d8] sm:$0xff] %vm149_vm2, %v3362_v58 }
 0x1ef   :  { %v3364_v59 = vpop.eup %3363 }
 0x1f0   :  { %2030 = vst.msk [vmem:[%s4798_s3 + $0x1e8] sm:$0xff] %vm149_vm2, %v3364_v59 }
 0x1f1   :  { %v3366_v60 = vpop.eup %3365 }
 0x1f2   :  { %v3368_v61 = vpop.eup %3367  ;;  %2093 = vst.msk [vmem:[%s4798_s3 + $0x3e0] sm:$0xff] %vm149_vm2, %v3366_v60 }
 0x1f3   :  { %2031 = vst.msk [vmem:[%s4798_s3 + $0x1f0] sm:$0xff] %vm149_vm2, %v3368_v61 }

</bundles_post_ra>
